<compile_context>
chip_gen: v7x
topology: tpu7x:2x2x1
jax: 0.10.0
libtpu: 0.0.40
codegen_flags: <defaults>
</compile_context>

<pallas_src>
import functools

import jax
import jax.numpy as jnp
import numpy as np
from jax.experimental import pallas as pl
from jax.experimental.pallas import tpu as pltpu


def _round_up(n, m):
    return ((n + m - 1) // m) * m


# ----------------------------------------------------------------------------
# Fused Pallas kernel: Conv2d -> (in-register zero-pad mask) -> conv with the
# flipped kernel, all on spatially-flattened, lane-dense (C, spatial) slabs.
# ----------------------------------------------------------------------------
def _ae_fused_kernel(x_ref, we_ref, be_ref, wd_ref, bd_ref, o_ref, *,
                     K, Wf, frame, Lf, pd, Ho, Wo, Cin_p, Cout_p, n_y, n_dec):
    """
    x_ref  : (Cin_p , Lx)          zero-embedded input canvas (lane-dense)
    we_ref : (Cout_p, K*K*Cin_p)   packed encoder weights
    be_ref : (Cout_p, 1)           encoder bias (column)
    wd_ref : (Cin_p , K*K*Cout_p)  packed decoder weights (flipped kernel)
    bd_ref : (Cin_p , 1)           decoder bias (column)
    o_ref  : (Cin_p , n_dec)       decoder output canvas (n_dec % 128 == 0,
                                   cropped by the wrapper)
    """
    x = x_ref[...]
    we = we_ref[...]
    wd = wd_ref[...]

    # ---- encoder: unrolled tap accumulation (no im2col materialization) -----
    acc = jnp.zeros((Cout_p, n_y), jnp.float32)
    for kh in range(K):
        for kw in range(K):
            t = kh * K + kw
            s = kh * Wf + kw
            tap = x[:, s: s + n_y]                              # (Cin_p, n_y)
            acc = acc + jnp.dot(we[:, t * Cin_p:(t + 1) * Cin_p], tap,
                                preferred_element_type=jnp.float32)
    y = acc + be_ref[...]                                       # (Cout_p, n_y)

    # ---- validity mask generated in-register: 1 on valid Conv2d outputs,
    # ---- 0 elsewhere == the zero-padding ring the transposed conv needs.
    # div-free (float floor with +0.5 guard) to avoid vector integer division.
    colf = jax.lax.broadcasted_iota(jnp.int32, (Cout_p, n_y), 1)
    colf = colf.astype(jnp.float32)
    img = jnp.floor((colf + 0.5) * (1.0 / frame))               # image index
    off = colf - img * frame                                    # col in frame
    row_i = jnp.floor((off + 0.5) * (1.0 / Wf))
    col_j = off - row_i * Wf
    valid = ((colf < Lf)
             & (row_i >= pd) & (row_i < pd + Ho)
             & (col_j >= pd) & (col_j < pd + Wo))
    y = jnp.where(valid, y, 0.0)

    # ---- decoder: same unrolled tap accumulation on the masked activation ---
    acc2 = jnp.zeros((Cin_p, n_dec), jnp.float32)
    for kh in range(K):
        for kw in range(K):
            t = kh * K + kw
            s = kh * Wf + kw
            tap = y[:, s: s + n_dec]                            # (Cout_p, n_dec)
            acc2 = acc2 + jnp.dot(wd[:, t * Cout_p:(t + 1) * Cout_p], tap,
                                  preferred_element_type=jnp.float32)
    o_ref[...] = (acc2 + bd_ref[...]).astype(o_ref.dtype)


# ----------------------------------------------------------------------------
# One-time parameter packing (numpy, outside the jitted forward).
# ----------------------------------------------------------------------------
def prepare_autoencoder_params(enc_w, enc_b, dec_w, dec_b):
    """Pack PyTorch-layout weights into the kernel's matmul layout.

    enc_w : (Cout, Cin, K, K)   nn.Conv2d weight
    dec_w : (Cout, Cin, K, K)   nn.ConvTranspose2d weight (in, out, K, K)
    """
    enc_w = np.asarray(enc_w, np.float32)
    dec_w = np.asarray(dec_w, np.float32)
    enc_b = np.asarray(enc_b, np.float32)
    dec_b = np.asarray(dec_b, np.float32)
    Cout, Cin, K, _ = enc_w.shape
    Cin_p, Cout_p = _round_up(Cin, 8), _round_up(Cout, 8)    # tile-aligned rows

    we = np.zeros((Cout_p, K * K * Cin_p), np.float32)
    wd = np.zeros((Cin_p, K * K * Cout_p), np.float32)
    wfl = dec_w[:, :, ::-1, ::-1]          # spatial flip: transpose-conv -> conv
    for kh in range(K):
        for kw in range(K):
            t = kh * K + kw
            we[:Cout, t * Cin_p: t * Cin_p + Cin] = enc_w[:, :, kh, kw]     # (Cout, Cin)
            wd[:Cin, t * Cout_p: t * Cout_p + Cout] = wfl[:, :, kh, kw].T   # (Cin, Cout)
    be = np.zeros((Cout_p, 1), np.float32)
    be[:Cout, 0] = enc_b
    bd = np.zeros((Cin_p, 1), np.float32)
    bd[:Cin, 0] = dec_b
    return jnp.asarray(we), jnp.asarray(be), jnp.asarray(wd), jnp.asarray(bd)


# ----------------------------------------------------------------------------
# Jitted forward: single pad -> fused Pallas kernel -> crop to NCHW.
# ----------------------------------------------------------------------------
@functools.partial(jax.jit, static_argnames=("kernel_size", "padding"))
def autoencoder_forward(x, we, be, wd, bd, *, kernel_size, padding=0):
    N, Cin, H, W = x.shape
    K, p = kernel_size, padding
    if not 0 <= p <= K - 1:
        raise ValueError("only 0 <= padding <= kernel_size-1 is supported")
    # TODO(synk): stride > 1 (dilated-input transposed conv) not implemented;
    #             the module default stride=1 is covered exactly.
    Cout_p = we.shape[0]
    Cin_p = wd.shape[0]
    assert we.shape[1] == K * K * Cin_p and wd.shape[1] == K * K * Cout_p

    # Common "canvas" frame holding both stages (flattened onto lanes):
    #   * the input sits at spatial offset (K-1, K-1) of each Hf x Wf frame,
    #   * the encoder output then lands at offset (pd, pd), pd = K-1-padding,
    #     already surrounded by the zero ring the transposed conv needs,
    #   * the decoder output lands at offset (0, 0).
    pd = K - 1 - p
    Ho, Wo = H + 2 * p - K + 1, W + 2 * p - K + 1     # encoder output size
    Hf, Wf = H + K - 1 + p, W + K - 1 + p             # canvas frame size
    frame = Hf * Wf
    Lf = N * frame                                    # batch folded into lanes
    s_max = (K - 1) * Wf + (K - 1)                    # largest tap shift
    n_dec = _round_up(Lf, 128)                        # lane-dense output width
    n_y = _round_up(n_dec + s_max, 128)               # encoder interm. width
    lx_needed = n_y + s_max                           # input canvas columns
    n_ghost = -(-(lx_needed - Lf) // frame)           # ghost frames to append
    Lx = Lf + n_ghost * frame

    # ---- input canvas: single pad (channel pad + ghost frame + spatial embed)
    off = K - 1
    xc = jnp.transpose(x.astype(jnp.float32), (1, 0, 2, 3))        # (Cin,N,H,W)
    xc = jnp.pad(xc, ((0, Cin_p - Cin), (0, n_ghost),
                      (off, Hf - H - off), (off, Wf - W - off)))
    xc = xc.reshape(Cin_p, Lx)

    kern = functools.partial(_ae_fused_kernel, K=K, Wf=Wf, frame=frame, Lf=Lf,
                             pd=pd, Ho=Ho, Wo=Wo, Cin_p=Cin_p, Cout_p=Cout_p,
                             n_y=n_y, n_dec=n_dec)
    z_flat = pl.pallas_call(
        kern,
        out_shape=jax.ShapeDtypeStruct((Cin_p, n_dec), jnp.float32),
        in_specs=[pl.BlockSpec(memory_space=pltpu.MemorySpace.VMEM)] * 5,
        out_specs=pl.BlockSpec(memory_space=pltpu.MemorySpace.VMEM),
    )(xc, we, be, wd, bd)

    # ---- crop the valid H x W window of each frame and return NCHW ----------
    z = z_flat[:Cin, :Lf].reshape(Cin, N, Hf, Wf)[:, :, :H, :W]
    return jnp.transpose(z, (1, 0, 2, 3)).astype(x.dtype)


# ----------------------------------------------------------------------------
# Pure-numpy reference (PyTorch semantics, stride=1, arbitrary padding).
# ----------------------------------------------------------------------------
def _ref_autoencoder(x, enc_w, enc_b, dec_w, dec_b, padding):
    N, Cin, H, W = x.shape
    Cout, _, K, _ = enc_w.shape
    p = padding
    xp = np.pad(x, ((0, 0), (0, 0), (p, p), (p, p)))
    Ho, Wo = H + 2 * p - K + 1, W + 2 * p - K + 1
    y = np.zeros((N, Cout, Ho, Wo), np.float32)
    for n in range(N):
        for co in range(Cout):
            for i in range(Ho):
                for j in range(Wo):
                    y[n, co, i, j] = np.sum(
                        xp[n, :, i:i + K, j:j + K] * enc_w[co]) + enc_b[co]
    zfull = np.zeros((N, Cin, Ho + K - 1, Wo + K - 1), np.float32)
    for n in range(N):
        for co in range(Cout):
            for i in range(Ho):
                for j in range(Wo):
                    zfull[n, :, i:i + K, j:j + K] += y[n, co, i, j] * dec_w[co]
    z = zfull[:, :, p:Ho + K - 1 - p, p:Wo + K - 1 - p]
    return z + dec_b[None, :, None, None]


if __name__ == "__main__":
    # Module config: Autoencoder(in_channel=4, out_channel=8, kernel_size=3)
    in_channel, out_channel, kernel_size = 4, 8, 3
    N, H, W = 2, 16, 16

    key = jax.random.PRNGKey(0)
    k_x, k_ew, k_eb, k_dw, k_db = jax.random.split(key, 5)

    x = jax.random.normal(k_x, (N, in_channel, H, W), jnp.float32)

    enc_bound = 1.0 / np.sqrt(in_channel * kernel_size * kernel_size)
    enc_w = jax.random.uniform(
        k_ew, (out_channel, in_channel, kernel_size, kernel_size),
        jnp.float32, -enc_bound, enc_bound)                       # Conv2d OIHW
    enc_b = jax.random.uniform(k_eb, (out_channel,), jnp.float32,
                               -enc_bound, enc_bound)

    dec_bound = 1.0 / np.sqrt(out_channel * kernel_size * kernel_size)
    dec_w = jax.random.uniform(
        k_dw, (out_channel, in_channel, kernel_size, kernel_size),
        jnp.float32, -dec_bound, dec_bound)                       # ConvT (in,out,K,K)
    dec_b = jax.random.uniform(k_db, (in_channel,), jnp.float32,
                               -dec_bound, dec_bound)

    # One-time weight packing (outside the jitted hot path).
    we, be, wd, bd = prepare_autoencoder_params(enc_w, enc_b, dec_w, dec_b)

    # Exercise both the default padding=0 path and a padding>0 path.
    for padding in (0, 1):
        out = autoencoder_forward(x, we, be, wd, bd,
                                  kernel_size=kernel_size, padding=padding)
        out = jax.block_until_ready(out)
        assert out.shape == (N, in_channel, H, W), out.shape
        ref = _ref_autoencoder(np.asarray(x), np.asarray(enc_w),
                               np.asarray(enc_b), np.asarray(dec_w),
                               np.asarray(dec_b), padding)
        np.testing.assert_allclose(np.asarray(out), ref, rtol=1e-4, atol=1e-4)

    print("KERNEL_OK")
</pallas_src>

<mosaic_0001>
module attributes {stable_mosaic.version = 11 : i64} {
  func.func @_ae_fused_kernel(%arg0: memref<8x972xf32, #tpu.memory_space<vmem>>, %arg1: memref<8x72xf32, #tpu.memory_space<vmem>>, %arg2: memref<8x1xf32, #tpu.memory_space<vmem>>, %arg3: memref<8x72xf32, #tpu.memory_space<vmem>>, %arg4: memref<8x1xf32, #tpu.memory_space<vmem>>, %arg5: memref<8x768xf32, #tpu.memory_space<vmem>>) attributes {dimension_semantics = [], scalar_prefetch = 0 : i64, scratch_operands = 0 : i64, tpu.core_type = #tpu.core_type<tc>} {
    %c0 = arith.constant 0 : index
    %c0_0 = arith.constant 0 : index
    %0 = vector.load %arg0[%c0, %c0_0] : memref<8x972xf32, #tpu.memory_space<vmem>>, vector<8x972xf32>
    %c0_1 = arith.constant 0 : index
    %c0_2 = arith.constant 0 : index
    %1 = vector.load %arg1[%c0_1, %c0_2] : memref<8x72xf32, #tpu.memory_space<vmem>>, vector<8x72xf32>
    %c0_3 = arith.constant 0 : index
    %c0_4 = arith.constant 0 : index
    %2 = vector.load %arg3[%c0_3, %c0_4] : memref<8x72xf32, #tpu.memory_space<vmem>>, vector<8x72xf32>
    %cst = arith.constant 0.000000e+00 : f32
    %3 = vector.broadcast %cst : f32 to vector<8x896xf32>
    %4 = vector.extract_strided_slice %0 {offsets = [0, 0], sizes = [8, 896], strides = [1, 1]} : vector<8x972xf32> to vector<8x896xf32>
    %5 = vector.extract_strided_slice %1 {offsets = [0, 0], sizes = [8, 8], strides = [1, 1]} : vector<8x72xf32> to vector<8x8xf32>
    %cst_5 = arith.constant dense<0.000000e+00> : vector<8x896xf32>
    %6 = tpu.matmul %5, %4, %cst_5 {dimension_numbers = #tpu.dot_dimension_numbers<[1], [0], [0], [1], [0, 0, 1, 1], [], []>} : vector<8x8xf32>, vector<8x896xf32>, vector<8x896xf32> -> vector<8x896xf32>
    %7 = arith.addf %3, %6 : vector<8x896xf32>
    %8 = vector.extract_strided_slice %0 {offsets = [0, 1], sizes = [8, 896], strides = [1, 1]} : vector<8x972xf32> to vector<8x896xf32>
    %9 = vector.extract_strided_slice %1 {offsets = [0, 8], sizes = [8, 8], strides = [1, 1]} : vector<8x72xf32> to vector<8x8xf32>
    %cst_6 = arith.constant dense<0.000000e+00> : vector<8x896xf32>
    %10 = tpu.matmul %9, %8, %cst_6 {dimension_numbers = #tpu.dot_dimension_numbers<[1], [0], [0], [1], [0, 0, 1, 1], [], []>} : vector<8x8xf32>, vector<8x896xf32>, vector<8x896xf32> -> vector<8x896xf32>
    %11 = arith.addf %7, %10 : vector<8x896xf32>
    %12 = vector.extract_strided_slice %0 {offsets = [0, 2], sizes = [8, 896], strides = [1, 1]} : vector<8x972xf32> to vector<8x896xf32>
    %13 = vector.extract_strided_slice %1 {offsets = [0, 16], sizes = [8, 8], strides = [1, 1]} : vector<8x72xf32> to vector<8x8xf32>
    %cst_7 = arith.constant dense<0.000000e+00> : vector<8x896xf32>
    %14 = tpu.matmul %13, %12, %cst_7 {dimension_numbers = #tpu.dot_dimension_numbers<[1], [0], [0], [1], [0, 0, 1, 1], [], []>} : vector<8x8xf32>, vector<8x896xf32>, vector<8x896xf32> -> vector<8x896xf32>
    %15 = arith.addf %11, %14 : vector<8x896xf32>
    %16 = vector.extract_strided_slice %0 {offsets = [0, 18], sizes = [8, 896], strides = [1, 1]} : vector<8x972xf32> to vector<8x896xf32>
    %17 = vector.extract_strided_slice %1 {offsets = [0, 24], sizes = [8, 8], strides = [1, 1]} : vector<8x72xf32> to vector<8x8xf32>
    %cst_8 = arith.constant dense<0.000000e+00> : vector<8x896xf32>
    %18 = tpu.matmul %17, %16, %cst_8 {dimension_numbers = #tpu.dot_dimension_numbers<[1], [0], [0], [1], [0, 0, 1, 1], [], []>} : vector<8x8xf32>, vector<8x896xf32>, vector<8x896xf32> -> vector<8x896xf32>
    %19 = arith.addf %15, %18 : vector<8x896xf32>
    %20 = vector.extract_strided_slice %0 {offsets = [0, 19], sizes = [8, 896], strides = [1, 1]} : vector<8x972xf32> to vector<8x896xf32>
    %21 = vector.extract_strided_slice %1 {offsets = [0, 32], sizes = [8, 8], strides = [1, 1]} : vector<8x72xf32> to vector<8x8xf32>
    %cst_9 = arith.constant dense<0.000000e+00> : vector<8x896xf32>
    %22 = tpu.matmul %21, %20, %cst_9 {dimension_numbers = #tpu.dot_dimension_numbers<[1], [0], [0], [1], [0, 0, 1, 1], [], []>} : vector<8x8xf32>, vector<8x896xf32>, vector<8x896xf32> -> vector<8x896xf32>
    %23 = arith.addf %19, %22 : vector<8x896xf32>
    %24 = vector.extract_strided_slice %0 {offsets = [0, 20], sizes = [8, 896], strides = [1, 1]} : vector<8x972xf32> to vector<8x896xf32>
    %25 = vector.extract_strided_slice %1 {offsets = [0, 40], sizes = [8, 8], strides = [1, 1]} : vector<8x72xf32> to vector<8x8xf32>
    %cst_10 = arith.constant dense<0.000000e+00> : vector<8x896xf32>
    %26 = tpu.matmul %25, %24, %cst_10 {dimension_numbers = #tpu.dot_dimension_numbers<[1], [0], [0], [1], [0, 0, 1, 1], [], []>} : vector<8x8xf32>, vector<8x896xf32>, vector<8x896xf32> -> vector<8x896xf32>
    %27 = arith.addf %23, %26 : vector<8x896xf32>
    %28 = vector.extract_strided_slice %0 {offsets = [0, 36], sizes = [8, 896], strides = [1, 1]} : vector<8x972xf32> to vector<8x896xf32>
    %29 = vector.extract_strided_slice %1 {offsets = [0, 48], sizes = [8, 8], strides = [1, 1]} : vector<8x72xf32> to vector<8x8xf32>
    %cst_11 = arith.constant dense<0.000000e+00> : vector<8x896xf32>
    %30 = tpu.matmul %29, %28, %cst_11 {dimension_numbers = #tpu.dot_dimension_numbers<[1], [0], [0], [1], [0, 0, 1, 1], [], []>} : vector<8x8xf32>, vector<8x896xf32>, vector<8x896xf32> -> vector<8x896xf32>
    %31 = arith.addf %27, %30 : vector<8x896xf32>
    %32 = vector.extract_strided_slice %0 {offsets = [0, 37], sizes = [8, 896], strides = [1, 1]} : vector<8x972xf32> to vector<8x896xf32>
    %33 = vector.extract_strided_slice %1 {offsets = [0, 56], sizes = [8, 8], strides = [1, 1]} : vector<8x72xf32> to vector<8x8xf32>
    %cst_12 = arith.constant dense<0.000000e+00> : vector<8x896xf32>
    %34 = tpu.matmul %33, %32, %cst_12 {dimension_numbers = #tpu.dot_dimension_numbers<[1], [0], [0], [1], [0, 0, 1, 1], [], []>} : vector<8x8xf32>, vector<8x896xf32>, vector<8x896xf32> -> vector<8x896xf32>
    %35 = arith.addf %31, %34 : vector<8x896xf32>
    %36 = vector.extract_strided_slice %0 {offsets = [0, 38], sizes = [8, 896], strides = [1, 1]} : vector<8x972xf32> to vector<8x896xf32>
    %37 = vector.extract_strided_slice %1 {offsets = [0, 64], sizes = [8, 8], strides = [1, 1]} : vector<8x72xf32> to vector<8x8xf32>
    %cst_13 = arith.constant dense<0.000000e+00> : vector<8x896xf32>
    %38 = tpu.matmul %37, %36, %cst_13 {dimension_numbers = #tpu.dot_dimension_numbers<[1], [0], [0], [1], [0, 0, 1, 1], [], []>} : vector<8x8xf32>, vector<8x896xf32>, vector<8x896xf32> -> vector<8x896xf32>
    %39 = arith.addf %35, %38 : vector<8x896xf32>
    %c0_14 = arith.constant 0 : index
    %c0_15 = arith.constant 0 : index
    %40 = vector.load %arg2[%c0_14, %c0_15] : memref<8x1xf32, #tpu.memory_space<vmem>>, vector<8x1xf32>
    %41 = vector.broadcast %40 : vector<8x1xf32> to vector<8x896xf32>
    %42 = arith.addf %39, %41 : vector<8x896xf32>
    %43 = tpu.iota {dimensions = array<i32: 1>} : vector<8x896xi32>
    %44 = arith.sitofp %43 : vector<8x896xi32> to vector<8x896xf32>
    %cst_16 = arith.constant 5.000000e-01 : f32
    %45 = vector.broadcast %cst_16 : f32 to vector<8x896xf32>
    %46 = arith.addf %44, %45 : vector<8x896xf32>
    %cst_17 = arith.constant 0.00308641978 : f32
    %47 = vector.broadcast %cst_17 : f32 to vector<8x896xf32>
    %48 = arith.mulf %46, %47 : vector<8x896xf32>
    %49 = math.floor %48 : vector<8x896xf32>
    %cst_18 = arith.constant 3.240000e+02 : f32
    %50 = vector.broadcast %cst_18 : f32 to vector<8x896xf32>
    %51 = arith.mulf %49, %50 : vector<8x896xf32>
    %52 = arith.subf %44, %51 : vector<8x896xf32>
    %cst_19 = arith.constant 5.000000e-01 : f32
    %53 = vector.broadcast %cst_19 : f32 to vector<8x896xf32>
    %54 = arith.addf %52, %53 : vector<8x896xf32>
    %cst_20 = arith.constant 0.055555556 : f32
    %55 = vector.broadcast %cst_20 : f32 to vector<8x896xf32>
    %56 = arith.mulf %54, %55 : vector<8x896xf32>
    %57 = math.floor %56 : vector<8x896xf32>
    %cst_21 = arith.constant 1.800000e+01 : f32
    %58 = vector.broadcast %cst_21 : f32 to vector<8x896xf32>
    %59 = arith.mulf %57, %58 : vector<8x896xf32>
    %60 = arith.subf %52, %59 : vector<8x896xf32>
    %cst_22 = arith.constant 6.480000e+02 : f32
    %61 = vector.broadcast %cst_22 : f32 to vector<8x896xf32>
    %62 = arith.cmpf olt, %44, %61 : vector<8x896xf32>
    %cst_23 = arith.constant 2.000000e+00 : f32
    %63 = vector.broadcast %cst_23 : f32 to vector<8x896xf32>
    %64 = arith.cmpf oge, %57, %63 : vector<8x896xf32>
    %65 = arith.andi %62, %64 : vector<8x896xi1>
    %cst_24 = arith.constant 1.600000e+01 : f32
    %66 = vector.broadcast %cst_24 : f32 to vector<8x896xf32>
    %67 = arith.cmpf olt, %57, %66 : vector<8x896xf32>
    %68 = arith.andi %65, %67 : vector<8x896xi1>
    %cst_25 = arith.constant 2.000000e+00 : f32
    %69 = vector.broadcast %cst_25 : f32 to vector<8x896xf32>
    %70 = arith.cmpf oge, %60, %69 : vector<8x896xf32>
    %71 = arith.andi %68, %70 : vector<8x896xi1>
    %cst_26 = arith.constant 1.600000e+01 : f32
    %72 = vector.broadcast %cst_26 : f32 to vector<8x896xf32>
    %73 = arith.cmpf olt, %60, %72 : vector<8x896xf32>
    %74 = arith.andi %71, %73 : vector<8x896xi1>
    %cst_27 = arith.constant 0.000000e+00 : f32
    %75 = vector.broadcast %cst_27 : f32 to vector<8x896xf32>
    %76 = arith.select %74, %42, %75 : vector<8x896xi1>, vector<8x896xf32>
    %cst_28 = arith.constant 0.000000e+00 : f32
    %77 = vector.broadcast %cst_28 : f32 to vector<8x768xf32>
    %78 = vector.extract_strided_slice %76 {offsets = [0, 0], sizes = [8, 768], strides = [1, 1]} : vector<8x896xf32> to vector<8x768xf32>
    %79 = vector.extract_strided_slice %2 {offsets = [0, 0], sizes = [8, 8], strides = [1, 1]} : vector<8x72xf32> to vector<8x8xf32>
    %cst_29 = arith.constant dense<0.000000e+00> : vector<8x768xf32>
    %80 = tpu.matmul %79, %78, %cst_29 {dimension_numbers = #tpu.dot_dimension_numbers<[1], [0], [0], [1], [0, 0, 1, 1], [], []>} : vector<8x8xf32>, vector<8x768xf32>, vector<8x768xf32> -> vector<8x768xf32>
    %81 = arith.addf %77, %80 : vector<8x768xf32>
    %82 = vector.extract_strided_slice %76 {offsets = [0, 1], sizes = [8, 768], strides = [1, 1]} : vector<8x896xf32> to vector<8x768xf32>
    %83 = vector.extract_strided_slice %2 {offsets = [0, 8], sizes = [8, 8], strides = [1, 1]} : vector<8x72xf32> to vector<8x8xf32>
    %cst_30 = arith.constant dense<0.000000e+00> : vector<8x768xf32>
    %84 = tpu.matmul %83, %82, %cst_30 {dimension_numbers = #tpu.dot_dimension_numbers<[1], [0], [0], [1], [0, 0, 1, 1], [], []>} : vector<8x8xf32>, vector<8x768xf32>, vector<8x768xf32> -> vector<8x768xf32>
    %85 = arith.addf %81, %84 : vector<8x768xf32>
    %86 = vector.extract_strided_slice %76 {offsets = [0, 2], sizes = [8, 768], strides = [1, 1]} : vector<8x896xf32> to vector<8x768xf32>
    %87 = vector.extract_strided_slice %2 {offsets = [0, 16], sizes = [8, 8], strides = [1, 1]} : vector<8x72xf32> to vector<8x8xf32>
    %cst_31 = arith.constant dense<0.000000e+00> : vector<8x768xf32>
    %88 = tpu.matmul %87, %86, %cst_31 {dimension_numbers = #tpu.dot_dimension_numbers<[1], [0], [0], [1], [0, 0, 1, 1], [], []>} : vector<8x8xf32>, vector<8x768xf32>, vector<8x768xf32> -> vector<8x768xf32>
    %89 = arith.addf %85, %88 : vector<8x768xf32>
    %90 = vector.extract_strided_slice %76 {offsets = [0, 18], sizes = [8, 768], strides = [1, 1]} : vector<8x896xf32> to vector<8x768xf32>
    %91 = vector.extract_strided_slice %2 {offsets = [0, 24], sizes = [8, 8], strides = [1, 1]} : vector<8x72xf32> to vector<8x8xf32>
    %cst_32 = arith.constant dense<0.000000e+00> : vector<8x768xf32>
    %92 = tpu.matmul %91, %90, %cst_32 {dimension_numbers = #tpu.dot_dimension_numbers<[1], [0], [0], [1], [0, 0, 1, 1], [], []>} : vector<8x8xf32>, vector<8x768xf32>, vector<8x768xf32> -> vector<8x768xf32>
    %93 = arith.addf %89, %92 : vector<8x768xf32>
    %94 = vector.extract_strided_slice %76 {offsets = [0, 19], sizes = [8, 768], strides = [1, 1]} : vector<8x896xf32> to vector<8x768xf32>
    %95 = vector.extract_strided_slice %2 {offsets = [0, 32], sizes = [8, 8], strides = [1, 1]} : vector<8x72xf32> to vector<8x8xf32>
    %cst_33 = arith.constant dense<0.000000e+00> : vector<8x768xf32>
    %96 = tpu.matmul %95, %94, %cst_33 {dimension_numbers = #tpu.dot_dimension_numbers<[1], [0], [0], [1], [0, 0, 1, 1], [], []>} : vector<8x8xf32>, vector<8x768xf32>, vector<8x768xf32> -> vector<8x768xf32>
    %97 = arith.addf %93, %96 : vector<8x768xf32>
    %98 = vector.extract_strided_slice %76 {offsets = [0, 20], sizes = [8, 768], strides = [1, 1]} : vector<8x896xf32> to vector<8x768xf32>
    %99 = vector.extract_strided_slice %2 {offsets = [0, 40], sizes = [8, 8], strides = [1, 1]} : vector<8x72xf32> to vector<8x8xf32>
    %cst_34 = arith.constant dense<0.000000e+00> : vector<8x768xf32>
    %100 = tpu.matmul %99, %98, %cst_34 {dimension_numbers = #tpu.dot_dimension_numbers<[1], [0], [0], [1], [0, 0, 1, 1], [], []>} : vector<8x8xf32>, vector<8x768xf32>, vector<8x768xf32> -> vector<8x768xf32>
    %101 = arith.addf %97, %100 : vector<8x768xf32>
    %102 = vector.extract_strided_slice %76 {offsets = [0, 36], sizes = [8, 768], strides = [1, 1]} : vector<8x896xf32> to vector<8x768xf32>
    %103 = vector.extract_strided_slice %2 {offsets = [0, 48], sizes = [8, 8], strides = [1, 1]} : vector<8x72xf32> to vector<8x8xf32>
    %cst_35 = arith.constant dense<0.000000e+00> : vector<8x768xf32>
    %104 = tpu.matmul %103, %102, %cst_35 {dimension_numbers = #tpu.dot_dimension_numbers<[1], [0], [0], [1], [0, 0, 1, 1], [], []>} : vector<8x8xf32>, vector<8x768xf32>, vector<8x768xf32> -> vector<8x768xf32>
    %105 = arith.addf %101, %104 : vector<8x768xf32>
    %106 = vector.extract_strided_slice %76 {offsets = [0, 37], sizes = [8, 768], strides = [1, 1]} : vector<8x896xf32> to vector<8x768xf32>
    %107 = vector.extract_strided_slice %2 {offsets = [0, 56], sizes = [8, 8], strides = [1, 1]} : vector<8x72xf32> to vector<8x8xf32>
    %cst_36 = arith.constant dense<0.000000e+00> : vector<8x768xf32>
    %108 = tpu.matmul %107, %106, %cst_36 {dimension_numbers = #tpu.dot_dimension_numbers<[1], [0], [0], [1], [0, 0, 1, 1], [], []>} : vector<8x8xf32>, vector<8x768xf32>, vector<8x768xf32> -> vector<8x768xf32>
    %109 = arith.addf %105, %108 : vector<8x768xf32>
    %110 = vector.extract_strided_slice %76 {offsets = [0, 38], sizes = [8, 768], strides = [1, 1]} : vector<8x896xf32> to vector<8x768xf32>
    %111 = vector.extract_strided_slice %2 {offsets = [0, 64], sizes = [8, 8], strides = [1, 1]} : vector<8x72xf32> to vector<8x8xf32>
    %cst_37 = arith.constant dense<0.000000e+00> : vector<8x768xf32>
    %112 = tpu.matmul %111, %110, %cst_37 {dimension_numbers = #tpu.dot_dimension_numbers<[1], [0], [0], [1], [0, 0, 1, 1], [], []>} : vector<8x8xf32>, vector<8x768xf32>, vector<8x768xf32> -> vector<8x768xf32>
    %113 = arith.addf %109, %112 : vector<8x768xf32>
    %c0_38 = arith.constant 0 : index
    %c0_39 = arith.constant 0 : index
    %114 = vector.load %arg4[%c0_38, %c0_39] : memref<8x1xf32, #tpu.memory_space<vmem>>, vector<8x1xf32>
    %115 = vector.broadcast %114 : vector<8x1xf32> to vector<8x768xf32>
    %116 = arith.addf %113, %115 : vector<8x768xf32>
    %c0_40 = arith.constant 0 : index
    %c0_41 = arith.constant 0 : index
    %117 = vector.load %arg5[%c0_40, %c0_41] : memref<8x768xf32, #tpu.memory_space<vmem>>, vector<8x768xf32>
    tpu.vector_store %arg5[%c0_40, %c0_41], %116 {strides = array<i32>} : memref<8x768xf32, #tpu.memory_space<vmem>>, vector<8x768xf32>,
    return
  }
}

</mosaic_0001>

<bundles_post_ra>
// kernel: autoencoder_forward.1
= control target key start
LH: loop header
LB: loop body
LE: loop exit
PB: predicated region body
PF: predicated region fallthrough
CT: control target
= control target key end

     0   :  { %v5559_v2 = vmov 0.0   ;;  %s5560_s22 = smov 127   ;;  %s5561_s27 = smov 120   ;;  %vm57_vm0 = vcmask 1039360   ;;  %vm6422_vm1 = vcmask 64512   ;;  %vm5575_vm2 = vmmov 0   ;;  %s6409_s0 = inlined_call_operand.vmem [shape: f32[8,972], index: 0, kind: input, shape index: {}]   ;;  %s6410_s1 = inlined_call_operand.vmem [shape: f32[8,72], index: 1, kind: input, shape index: {}]   ;;  %s6411_s2 = inlined_call_operand.vmem [shape: f32[8,1], index: 2, kind: input, shape index: {}]   ;;  %s6412_s3 = inlined_call_operand.vmem [shape: f32[8,72], index: 3, kind: input, shape index: {}]   ;;  %s6413_s4 = inlined_call_operand.vmem [shape: f32[8,1], index: 4, kind: input, shape index: {}]   ;;  %s6414_s5 = inlined_call_operand.vmem [shape: f32[8,768], index: 5, kind: output, shape index: {}]  }
   0x1   :  { %v5611_v0 = vld [vmem:[%s6409_s0 + $0x8] sm:$0xff]  ;;  %v5616_v1 = vld [vmem:[%s6409_s0] sm:$0xff]  ;;  %139 = vmatprep.mubr.f32.mxu1 %v5559_v2  ;;  %742 = vmatprep.mubr.f32.mxu0 %v5559_v2  ;;  %v5627_v3 = vld [vmem:[%s6409_s0 + $0x10] sm:$0xff]  ;;  %s5562_s12 = smov 126   ;;  %s5564_s13 = smov 110   ;;  %v5576_v27 = vmov 0  }
   0x2   :  { %43 = vrot.lane.b32.xlu0 %v5611_v0, %s5560_s22  ;;  %41 = vrot.lane.b32.xlu1 %v5616_v1, %s5560_s22  ;;  %v5632_v4 = vld [vmem:[%s6410_s1] sm:$0xff]  ;;  %v5641_v5 = vld [vmem:[%s6409_s0 + $0x18] sm:$0xff]  ;;  %s5565_s14 = smov 104   ;;  %s5566_s15 = smov 109   ;;  %vm6421_vm3 = vcmask 1031168   ;;  %vm6420_vm4 = vcmask 900096  }
   0x3   :  { %v5646_v6 = vld [vmem:[%s6409_s0 + $0x20] sm:$0xff]  ;;  %v5655_v7 = vld [vmem:[%s6409_s0 + $0x28] sm:$0xff]  ;;  %v5660_v8 = vld [vmem:[%s6409_s0 + $0x30] sm:$0xff]  ;;  %s5567_s16 = smov 96   ;;  %s5568_s17 = smov 108   ;;  %5558 = vset.pattern.permute.xlu0 %v5576_v27  ;;  %vm6419_vm5 = vcmask 891904  }
   0x4   :  { %v5669_v9 = vld [vmem:[%s6409_s0 + $0x38] sm:$0xff]  ;;  %s5563_s0 = smov 112   ;;  %s5569_s18 = smov 88   ;;  %v2918_v36 = vld [vmem:[%s6411_s2] sm:$0xff]  ;;  %vm6418_vm6 = vcmask 883712   ;;  %vm6417_vm7 = vcmask 752640  }
   0x5   :  { %s5570_s19 = smov 92   ;;  %s5571_s20 = smov 80   ;;  %vm6416_vm8 = vcmask 744448   ;;  %vm6415_vm9 = vcmask 736256  }
   0x6   :  { %45 = vrot.lane.b32.xlu0 %v5627_v3, %s5560_s22  ;;  %31 = vrot.lane.b32.xlu1 %v5632_v4, %s5561_s27  ;;  %s5572_s21 = smov 91   ;;  %s5573_s23 = smov 72  }
   0x7   :  { %s5574_s24 = smov 90   ;;  %s5577_s25 = smov 64  }
   0xa   :  { %47 = vrot.lane.b32.xlu0 %v5641_v5, %s5560_s22  ;;  %49 = vrot.lane.b32.xlu1 %v5646_v6, %s5560_s22 }
   0xe   :  { %51 = vrot.lane.b32.xlu0 %v5655_v7, %s5560_s22  ;;  %53 = vrot.lane.b32.xlu1 %v5660_v8, %s5560_s22 }
  0x12   :  { %55 = vrot.lane.b32.xlu0 %v5669_v9, %s5560_s22  ;;  %647 = vrot.lane.b32.xlu1 %v5611_v0, %s5562_s12 }
  0x16   :  { %649 = vrot.lane.b32.xlu0 %v5627_v3, %s5562_s12  ;;  %645 = vrot.lane.b32.xlu1 %v5616_v1, %s5562_s12 }
  0x1a   :  { %651 = vrot.lane.b32.xlu0 %v5641_v5, %s5562_s12  ;;  %653 = vrot.lane.b32.xlu1 %v5646_v6, %s5562_s12 }
  0x1e   :  { %643 = vrot.lane.b32.xlu0 %v5632_v4, %s5563_s0  ;;  %655 = vrot.lane.b32.xlu1 %v5655_v7, %s5562_s12 }
  0x22   :  { %657 = vrot.lane.b32.xlu0 %v5660_v8, %s5562_s12  ;;  %659 = vrot.lane.b32.xlu1 %v5669_v9, %s5562_s12 }
  0x26   :  { %972 = vrot.lane.b32.xlu0 %v5611_v0, %s5564_s13  ;;  %974 = vrot.lane.b32.xlu1 %v5627_v3, %s5564_s13 }
  0x2a   :  { %970 = vrot.lane.b32.xlu0 %v5616_v1, %s5564_s13  ;;  %976 = vrot.lane.b32.xlu1 %v5641_v5, %s5564_s13 }
  0x2e   :  { %978 = vrot.lane.b32.xlu0 %v5646_v6, %s5564_s13  ;;  %968 = vrot.lane.b32.xlu1 %v5632_v4, %s5565_s14 }
  0x32   :  { %980 = vrot.lane.b32.xlu0 %v5655_v7, %s5564_s13  ;;  %982 = vrot.lane.b32.xlu1 %v5660_v8, %s5564_s13 }
  0x36   :  { %984 = vrot.lane.b32.xlu0 %v5669_v9, %s5564_s13  ;;  %1297 = vrot.lane.b32.xlu1 %v5611_v0, %s5566_s15 }
  0x3a   :  { %1299 = vrot.lane.b32.xlu0 %v5627_v3, %s5566_s15  ;;  %1295 = vrot.lane.b32.xlu1 %v5616_v1, %s5566_s15 }
  0x3e   :  { %1301 = vrot.lane.b32.xlu0 %v5641_v5, %s5566_s15  ;;  %1303 = vrot.lane.b32.xlu1 %v5646_v6, %s5566_s15 }
  0x42   :  { %1293 = vrot.lane.b32.xlu0 %v5632_v4, %s5567_s16  ;;  %1305 = vrot.lane.b32.xlu1 %v5655_v7, %s5566_s15 }
  0x46   :  { %1307 = vrot.lane.b32.xlu0 %v5660_v8, %s5566_s15  ;;  %1309 = vrot.lane.b32.xlu1 %v5669_v9, %s5566_s15 }
  0x4a   :  { %1622 = vrot.lane.b32.xlu0 %v5611_v0, %s5568_s17  ;;  %1624 = vrot.lane.b32.xlu1 %v5627_v3, %s5568_s17 }
  0x4e   :  { %1620 = vrot.lane.b32.xlu0 %v5616_v1, %s5568_s17  ;;  %1626 = vrot.lane.b32.xlu1 %v5641_v5, %s5568_s17 }
  0x52   :  { %1628 = vrot.lane.b32.xlu0 %v5646_v6, %s5568_s17  ;;  %1618 = vrot.lane.b32.xlu1 %v5632_v4, %s5569_s18 }
  0x56   :  { %1630 = vrot.lane.b32.xlu0 %v5655_v7, %s5568_s17  ;;  %1632 = vrot.lane.b32.xlu1 %v5660_v8, %s5568_s17 }
  0x5a   :  { %1634 = vrot.lane.b32.xlu0 %v5669_v9, %s5568_s17  ;;  %1947 = vrot.lane.b32.xlu1 %v5611_v0, %s5570_s19 }
  0x5e   :  { %1949 = vrot.lane.b32.xlu0 %v5627_v3, %s5570_s19  ;;  %1945 = vrot.lane.b32.xlu1 %v5616_v1, %s5570_s19 }
  0x62   :  { %1951 = vrot.lane.b32.xlu0 %v5641_v5, %s5570_s19  ;;  %1953 = vrot.lane.b32.xlu1 %v5646_v6, %s5570_s19 }
  0x66   :  { %1943 = vrot.lane.b32.xlu0 %v5632_v4, %s5571_s20  ;;  %1955 = vrot.lane.b32.xlu1 %v5655_v7, %s5570_s19 }
  0x6a   :  { %1957 = vrot.lane.b32.xlu0 %v5660_v8, %s5570_s19  ;;  %1959 = vrot.lane.b32.xlu1 %v5669_v9, %s5570_s19 }
  0x6e   :  { %2272 = vrot.lane.b32.xlu0 %v5611_v0, %s5572_s21  ;;  %2274 = vrot.lane.b32.xlu1 %v5627_v3, %s5572_s21 }
  0x72   :  { %2270 = vrot.lane.b32.xlu0 %v5616_v1, %s5572_s21  ;;  %2276 = vrot.lane.b32.xlu1 %v5641_v5, %s5572_s21 }
  0x74   :  { %v44_v10 = vpop.permute.xlu0 %43  ;;  %v42_v11 = vpop.permute.xlu1 %41 }
  0x75   :  { %v58_v15 = vsel %vm57_vm0, %v42_v11, %v44_v10 }
  0x76   :  { %2278 = vrot.lane.b32.xlu0 %v5646_v6, %s5572_s21  ;;  %2268 = vrot.lane.b32.xlu1 %v5632_v4, %s5573_s23 }
  0x78   :  { %v46_v12 = vpop.permute.xlu0 %45  ;;  %v32_v13 = vpop.permute.xlu1 %31 }
  0x79   :  { %v59_v14 = vsel %vm57_vm0, %v44_v10, %v46_v12 }
  0x7a   :  { %75 = vmatprep.subr.mxu1 %v59_v14  ;;  %2280 = vrot.lane.b32.xlu0 %v5655_v7, %s5572_s21 }
  0x7b   :  { %2282 = vrot.lane.b32.xlu1 %v5660_v8, %s5572_s21  ;;  %76 = vmatpush1.msra.mxu1 %v58_v15 }
  0x7c   :  { %v48_v16 = vpop.permute.xlu0 %47  ;;  %5317 = vmatmul.mubr.msk.f32.vlgmr.msra.gmra.mrb[0].mxu1 %vm6422_vm1, %v32_v13  ;;  %v50_v17 = vpop.permute.xlu1 %49 }
  0x7d   :  { %v61_v18 = vsel %vm57_vm0, %v48_v16, %v50_v17  ;;  %v60_v19 = vsel %vm57_vm0, %v46_v12, %v48_v16  ;;  %210 = vmatprep.mubr.f32.mxu1 %v5559_v2 }
  0x7e   :  { %2284 = vrot.lane.b32.xlu0 %v5669_v9, %s5572_s21  ;;  %146 = vmatprep.subr.mxu1 %v61_v18 }
  0x7f   :  { %2597 = vrot.lane.b32.xlu1 %v5611_v0, %s5574_s24  ;;  %147 = vmatpush1.msra.mxu1 %v60_v19 }
  0x80   :  { %v52_v20 = vpop.permute.xlu0 %51  ;;  %5318 = vmatmul.mubr.msk.f32.vlgmr.msra.gmra.mrb[2].mxu1 %vm6422_vm1, %v32_v13  ;;  %v54_v21 = vpop.permute.xlu1 %53 }
  0x81   :  { %v63_v22 = vsel %vm57_vm0, %v52_v20, %v54_v21  ;;  %v62_v23 = vsel %vm57_vm0, %v50_v17, %v52_v20  ;;  %281 = vmatprep.mubr.f32.mxu1 %v5559_v2 }
  0x82   :  { %2599 = vrot.lane.b32.xlu0 %v5627_v3, %s5574_s24  ;;  %217 = vmatprep.subr.mxu1 %v63_v22 }
  0x83   :  { %2595 = vrot.lane.b32.xlu1 %v5616_v1, %s5574_s24  ;;  %218 = vmatpush1.msra.mxu1 %v62_v23 }
  0x84   :  { %v56_v24 = vpop.permute.xlu0 %55  ;;  %5319 = vmatmul.mubr.msk.f32.vlgmr.msra.gmra.mrb[4].mxu1 %vm6422_vm1, %v32_v13  ;;  %v648_v25 = vpop.permute.xlu1 %647  ;;  %5398 = vmatprep.subr.mxu1 %v5559_v2 }
  0x85   :  { %v64_v26 = vsel %vm57_vm0, %v54_v21, %v56_v24  ;;  %5400 = vmatprep.mubr.msk.f32.mxu1 %vm5575_vm2, %v5559_v2 }
  0x86   :  { %2601 = vrot.lane.b32.xlu0 %v5641_v5, %s5574_s24  ;;  %5399 = vmatpush3.msra.mxu1 %v64_v26 }
  0x87   :  { %2603 = vrot.lane.b32.xlu1 %v5646_v6, %s5574_s24  ;;  %360 = vmatprep.subr.mxu1 %v5611_v0 }
  0x88   :  { %v650_v28 = vpop.permute.xlu0 %649  ;;  %5401 = vmatmul.mubr.msk.f32.vlgmr.msra.gmra.mrb[6].mxu1 %vm6422_vm1, %v32_v13  ;;  %v646_v29 = vpop.permute.xlu1 %645 }
  0x89   :  { %v663_v30 = vsel %vm6421_vm3, %v648_v25, %v650_v28  ;;  %361 = vmatpush1.msra.mxu1 %v5616_v1  ;;  %424 = vmatprep.mubr.f32.mxu1 %v5559_v2  ;;  %v662_v31 = vsel %vm6421_vm3, %v646_v29, %v648_v25 }
  0x8a   :  { %2593 = vrot.lane.b32.xlu0 %v5632_v4, %s5577_s25  ;;  %678 = vmatprep.subr.mxu0 %v663_v30 }
  0x8b   :  { %2605 = vrot.lane.b32.xlu1 %v5655_v7, %s5574_s24  ;;  %679 = vmatpush1.msra.mxu0 %v662_v31 }
  0x8c   :  { %v652_v32 = vpop.permute.xlu0 %651  ;;  %5321 = vmatmul.mubr.msk.f32.vlgmr.msra.gmra.mrb[0].mxu1 %vm6422_vm1, %v5632_v4  ;;  %v654_v33 = vpop.permute.xlu1 %653  ;;  %431 = vmatprep.subr.mxu1 %v5641_v5 }
  0x8d   :  { %432 = vmatpush1.msra.mxu1 %v5627_v3  ;;  %495 = vmatprep.mubr.f32.mxu1 %v5559_v2  ;;  %v665_v39 = vsel %vm6421_vm3, %v652_v32, %v654_v33  ;;  %v664_v43 = vsel %vm6421_vm3, %v650_v28, %v652_v32 }
  0x8e   :  { %2607 = vrot.lane.b32.xlu0 %v5660_v8, %s5574_s24  ;;  %502 = vmatprep.subr.mxu1 %v5655_v7 }
  0x8f   :  { %2609 = vrot.lane.b32.xlu1 %v5669_v9, %s5574_s24 }
  0x90   :  { %v644_v34 = vpop.permute.xlu0 %643  ;;  %5322 = vmatmul.mubr.msk.f32.vlgmr.msra.gmra.mrb[2].mxu1 %vm6422_vm1, %v5632_v4  ;;  %v656_v35 = vpop.permute.xlu1 %655 }
  0x91   :  { %5325 = vmatmul.mubr.msk.f32.vlgmr.msra.gmra.mrb[0].mxu0 %vm6422_vm1, %v644_v34  ;;  %503 = vmatpush1.msra.mxu1 %v5646_v6  ;;  %v666_v41 = vsel %vm6421_vm3, %v654_v33, %v656_v35 }
  0x92   :  { %566 = vmatprep.mubr.f32.mxu1 %v5559_v2  ;;  %5403 = vmatprep.subr.mxu1 %v5559_v2 }
  0x93   :  { %884 = vmatprep.mubr.f32.mxu0 %v5559_v2  ;;  %2921 = vperm.xlu0 %5558, %v2918_v36  }
  0x94   :  { %v658_v37 = vpop.permute.xlu0 %657  ;;  %5323 = vmatmul.mubr.msk.f32.vlgmr.msra.gmra.mrb[4].mxu1 %vm6422_vm1, %v5632_v4  ;;  %v660_v38 = vpop.permute.xlu1 %659 }
  0x95   :  { %5404 = vmatpush3.msra.mxu1 %v5660_v8  ;;  %v667_v40 = vsel %vm6421_vm3, %v656_v35, %v658_v37  ;;  %5405 = vmatprep.mubr.msk.f32.mxu1 %vm5575_vm2, %v5559_v2  ;;  %v668_v46 = vsel %vm6421_vm3, %v658_v37, %v660_v38 }
  0x96   :  { %749 = vmatprep.subr.mxu1 %v665_v39  ;;  %820 = vmatprep.subr.mxu0 %v667_v40 }
  0x97   :  { %821 = vmatpush1.msra.mxu0 %v666_v41 }
  0x98   :  { %v973_v42 = vpop.permute.xlu0 %972  ;;  %5406 = vmatmul.mubr.msk.f32.vlgmr.msra.gmra.mrb[8].mxu1 %vm6422_vm1, %v5632_v4  ;;  %5327 = vmatmul.mubr.msk.f32.vlgmr.msra.gmra.mrb[2].mxu0 %vm6422_vm1, %v644_v34  ;;  %v975_v44 = vpop.permute.xlu1 %974 }
  0x99   :  { %750 = vmatpush1.msra.mxu1 %v664_v43  ;;  %v988_v45 = vsel %vm6420_vm4, %v973_v42, %v975_v44  ;;  %813 = vmatprep.mubr.f32.mxu1 %v5559_v2 }
  0x9a   :  { %1003 = vmatprep.subr.mxu0 %v988_v45  ;;  %5408 = vmatprep.subr.mxu1 %v5559_v2 }
  0x9b   :  { %1067 = vmatprep.mubr.f32.mxu0 %v5559_v2 }
  0x9c   :  { %v971_v47 = vpop.permute.xlu0 %970  ;;  %5326 = vmatmul.mubr.msk.f32.vlgmr.msra.gmra.mrb[2].mxu1 %vm6422_vm1, %v644_v34  ;;  %v977_v48 = vpop.permute.xlu1 %976 }
  0x9d   :  { %v987_v49 = vsel %vm6420_vm4, %v971_v47, %v973_v42  ;;  %5409 = vmatpush3.msra.mxu1 %v668_v46  ;;  %5410 = vmatprep.mubr.msk.f32.mxu1 %vm5575_vm2, %v5559_v2  ;;  %v989_v53 = vsel %vm6420_vm4, %v975_v44, %v977_v48 }
  0x9e   :  { %1004 = vmatpush1.msra.mxu0 %v987_v49 }
  0xa0   :  { %v979_v50 = vpop.permute.xlu0 %978  ;;  %5411 = vmatmul.mubr.msk.f32.vlgmr.msra.gmra.mrb[10].mxu1 %vm6422_vm1, %v644_v34  ;;  %v969_v51 = vpop.permute.xlu1 %968 }
  0xa1   :  { %v990_v52 = vsel %vm6420_vm4, %v977_v48, %v979_v50  ;;  %5329 = vmatmul.mubr.msk.f32.vlgmr.msra.gmra.mrb[0].mxu0 %vm6422_vm1, %v969_v51  ;;  %1138 = vmatprep.mubr.f32.mxu1 %v5559_v2 }
  0xa2   :  { %1074 = vmatprep.subr.mxu1 %v990_v52  ;;  %1209 = vmatprep.mubr.f32.mxu0 %v5559_v2 }
  0xa3   :  { %1075 = vmatpush1.msra.mxu1 %v989_v53 }
  0xa4   :  { %v981_v54 = vpop.permute.xlu0 %980  ;;  %v983_v55 = vpop.permute.xlu1 %982  ;;  %5330 = vmatmul.mubr.msk.f32.vlgmr.msra.gmra.mrb[2].mxu1 %vm6422_vm1, %v969_v51  ;;  %5413 = vmatprep.subr.mxu1 %v5559_v2 }
  0xa5   :  { %v992_v56 = vsel %vm6420_vm4, %v981_v54, %v983_v55  ;;  %v991_v57 = vsel %vm6420_vm4, %v979_v50, %v981_v54  ;;  %5415 = vmatprep.mubr.msk.f32.mxu1 %vm5575_vm2, %v5559_v2 }
  0xa6   :  { %1145 = vmatprep.subr.mxu0 %v992_v56 }
  0xa7   :  { %1146 = vmatpush1.msra.mxu0 %v991_v57 }
  0xa8   :  { %v985_v58 = vpop.permute.xlu0 %984  ;;  %5331 = vmatmul.mubr.msk.f32.vlgmr.msra.gmra.mrb[2].mxu0 %vm6422_vm1, %v969_v51  ;;  %v1298_v59 = vpop.permute.xlu1 %1297 }
  0xa9   :  { %v993_v60 = vsel %vm6420_vm4, %v983_v55, %v985_v58  ;;  %1392 = vmatprep.mubr.f32.mxu0 %v5559_v2 }
  0xaa   :  { %5414 = vmatpush3.msra.mxu1 %v993_v60 }
  0xab   :  { %5416 = vmatmul.mubr.msk.f32.vlgmr.msra.gmra.mrb[12].mxu1 %vm6422_vm1, %v969_v51 }
  0xac   :  { %v1300_v61 = vpop.permute.xlu0 %1299  ;;  %v1296_v62 = vpop.permute.xlu1 %1295  ;;  %1463 = vmatprep.mubr.f32.mxu1 %v5559_v2 }
  0xad   :  { %v1312_v63 = vsel %vm6419_vm5, %v1296_v62, %v1298_v59  ;;  %v1313_v0 = vsel %vm6419_vm5, %v1298_v59, %v1300_v61 }
  0xae   :  { %1328 = vmatprep.subr.mxu0 %v1313_v0 }
  0xaf   :  { %1329 = vmatpush1.msra.mxu0 %v1312_v63 }
  0xb0   :  { %v1302_v1 = vpop.permute.xlu0 %1301  ;;  %v1304_v3 = vpop.permute.xlu1 %1303 }
  0xb1   :  { %v1315_v4 = vsel %vm6419_vm5, %v1302_v1, %v1304_v3  ;;  %v1314_v5 = vsel %vm6419_vm5, %v1300_v61, %v1302_v1 }
  0xb2   :  { %1399 = vmatprep.subr.mxu1 %v1315_v4 }
  0xb3   :  { %1400 = vmatpush1.msra.mxu1 %v1314_v5 }
  0xb4   :  { %v1294_v6 = vpop.permute.xlu0 %1293  ;;  %v1306_v7 = vpop.permute.xlu1 %1305  ;;  %5418 = vmatprep.subr.mxu1 %v5559_v2 }
  0xb5   :  { %5333 = vmatmul.mubr.msk.f32.vlgmr.msra.gmra.mrb[0].mxu0 %vm6422_vm1, %v1294_v6  ;;  %5334 = vmatmul.mubr.msk.f32.vlgmr.msra.gmra.mrb[2].mxu1 %vm6422_vm1, %v1294_v6  ;;  %v1316_v12 = vsel %vm6419_vm5, %v1304_v3, %v1306_v7 }
  0xb6   :  { %5420 = vmatprep.mubr.msk.f32.mxu1 %vm5575_vm2, %v5559_v2  ;;  %1534 = vmatprep.mubr.f32.mxu0 %v5559_v2 }
  0xb8   :  { %v1308_v8 = vpop.permute.xlu0 %1307  ;;  %v1310_v9 = vpop.permute.xlu1 %1309 }
  0xb9   :  { %v1318_v10 = vsel %vm6419_vm5, %v1308_v8, %v1310_v9  ;;  %v1317_v11 = vsel %vm6419_vm5, %v1306_v7, %v1308_v8 }
  0xba   :  { %1470 = vmatprep.subr.mxu0 %v1317_v11  ;;  %5419 = vmatpush3.msra.mxu1 %v1318_v10 }
  0xbb   :  { %1471 = vmatpush1.msra.mxu0 %v1316_v12  ;;  %5421 = vmatmul.mubr.msk.f32.vlgmr.msra.gmra.mrb[14].mxu1 %vm6422_vm1, %v1294_v6 }
  0xbc   :  { %v1623_v13 = vpop.permute.xlu0 %1622  ;;  %5335 = vmatmul.mubr.msk.f32.vlgmr.msra.gmra.mrb[2].mxu0 %vm6422_vm1, %v1294_v6  ;;  %v1625_v14 = vpop.permute.xlu1 %1624  ;;  %1788 = vmatprep.mubr.f32.mxu1 %v5559_v2 }
  0xbd   :  { %v1638_v15 = vsel %vm6418_vm6, %v1623_v13, %v1625_v14  ;;  %1717 = vmatprep.mubr.f32.mxu0 %v5559_v2 }
  0xbe   :  { %1653 = vmatprep.subr.mxu0 %v1638_v15 }
  0xc0   :  { %v1621_v16 = vpop.permute.xlu0 %1620  ;;  %v1627_v17 = vpop.permute.xlu1 %1626 }
  0xc1   :  { %v1637_v18 = vsel %vm6418_vm6, %v1621_v16, %v1623_v13  ;;  %v1639_v22 = vsel %vm6418_vm6, %v1625_v14, %v1627_v17  ;;  %v5962_v14 = vld [vmem:[%s6412_s3] sm:$0xff] }
  0xc2   :  { %1654 = vmatpush1.msra.mxu0 %v1637_v18  ;;  %3087 = vrot.lane.b32.xlu1 %v5962_v14, %s5561_s27 }
  0xc4   :  { %v1629_v19 = vpop.permute.xlu0 %1628  ;;  %v1619_v20 = vpop.permute.xlu1 %1618 }
  0xc5   :  { %v1640_v21 = vsel %vm6418_vm6, %v1627_v17, %v1629_v19  ;;  %5337 = vmatmul.mubr.msk.f32.vlgmr.msra.gmra.mrb[0].mxu0 %vm6422_vm1, %v1619_v20 }
  0xc6   :  { %1724 = vmatprep.subr.mxu1 %v1640_v21  ;;  %1859 = vmatprep.mubr.f32.mxu0 %v5559_v2 }
  0xc7   :  { %1725 = vmatpush1.msra.mxu1 %v1639_v22  ;;  %3552 = vrot.lane.b32.xlu1 %v5962_v14, %s5563_s0 }
  0xc8   :  { %v1631_v23 = vpop.permute.xlu0 %1630  ;;  %v1633_v24 = vpop.permute.xlu1 %1632  ;;  %5338 = vmatmul.mubr.msk.f32.vlgmr.msra.gmra.mrb[2].mxu1 %vm6422_vm1, %v1619_v20  ;;  %5423 = vmatprep.subr.mxu1 %v5559_v2 }
  0xc9   :  { %v1641_v25 = vsel %vm6418_vm6, %v1629_v19, %v1631_v23  ;;  %v1642_v26 = vsel %vm6418_vm6, %v1631_v23, %v1633_v24  ;;  %5425 = vmatprep.mubr.msk.f32.mxu1 %vm5575_vm2, %v5559_v2 }
  0xca   :  { %1795 = vmatprep.subr.mxu0 %v1642_v26 }
  0xcb   :  { %1796 = vmatpush1.msra.mxu0 %v1641_v25  ;;  %3801 = vrot.lane.b32.xlu1 %v5962_v14, %s5565_s14 }
  0xcc   :  { %v1635_v27 = vpop.permute.xlu0 %1634  ;;  %5339 = vmatmul.mubr.msk.f32.vlgmr.msra.gmra.mrb[2].mxu0 %vm6422_vm1, %v1619_v20  ;;  %v1948_v28 = vpop.permute.xlu1 %1947 }
  0xcd   :  { %v1643_v29 = vsel %vm6418_vm6, %v1633_v24, %v1635_v27  ;;  %2042 = vmatprep.mubr.f32.mxu0 %v5559_v2 }
  0xce   :  { %5424 = vmatpush3.msra.mxu1 %v1643_v29 }
  0xcf   :  { %5426 = vmatmul.mubr.msk.f32.vlgmr.msra.gmra.mrb[16].mxu1 %vm6422_vm1, %v1619_v20  ;;  %4050 = vrot.lane.b32.xlu1 %v5962_v14, %s5567_s16 }
  0xd0   :  { %v1950_v30 = vpop.permute.xlu0 %1949  ;;  %v1946_v31 = vpop.permute.xlu1 %1945  ;;  %2113 = vmatprep.mubr.f32.mxu1 %v5559_v2 }
  0xd1   :  { %v1962_v32 = vsel %vm6417_vm7, %v1946_v31, %v1948_v28  ;;  %v1963_v33 = vsel %vm6417_vm7, %v1948_v28, %v1950_v30 }
  0xd2   :  { %1978 = vmatprep.subr.mxu0 %v1963_v33  ;;  %v2931_v33 = vlaneseq }
  0xd3   :  { %1979 = vmatpush1.msra.mxu0 %v1962_v32  ;;  %4299 = vrot.lane.b32.xlu1 %v5962_v14, %s5569_s18 }
  0xd4   :  { %v1952_v34 = vpop.permute.xlu0 %1951  ;;  %v1954_v35 = vpop.permute.xlu1 %1953 }
  0xd5   :  { %v1964_v36 = vsel %vm6417_vm7, %v1950_v30, %v1952_v34  ;;  %v1965_v37 = vsel %vm6417_vm7, %v1952_v34, %v1954_v35  ;;  %v5982_v34 = vand.u32 127, %v2931_v33 }
  0xd6   :  { %2049 = vmatprep.subr.mxu1 %v1965_v37 }
  0xd7   :  { %2050 = vmatpush1.msra.mxu1 %v1964_v36  ;;  %v2939_v36 = vcvt.s32.f32 %v5982_v34 }
  0xd8   :  { %v1944_v38 = vpop.permute.xlu0 %1943  ;;  %v1956_v39 = vpop.permute.xlu1 %1955  ;;  %5428 = vmatprep.subr.mxu1 %v5559_v2 }
  0xd9   :  { %5341 = vmatmul.mubr.msk.f32.vlgmr.msra.gmra.mrb[0].mxu0 %vm6422_vm1, %v1944_v38  ;;  %5342 = vmatmul.mubr.msk.f32.vlgmr.msra.gmra.mrb[2].mxu1 %vm6422_vm1, %v1944_v38  ;;  %v1966_v44 = vsel %vm6417_vm7, %v1954_v35, %v1956_v39  ;;  %v2933_v35 = vadd.s32 128, %v5982_v34  ;;  %vm3016_vm10 = vcmp.lt.f32.partialorder %v2939_v36, 648.0 }
  0xda   :  { %5430 = vmatprep.mubr.msk.f32.mxu1 %vm5575_vm2, %v5559_v2  ;;  %2184 = vmatprep.mubr.f32.mxu0 %v5559_v2 }
  0xdb   :  { %v2940_v37 = vcvt.s32.f32 %v2933_v35 }
  0xdc   :  { %v1958_v40 = vpop.permute.xlu0 %1957  ;;  %v1960_v41 = vpop.permute.xlu1 %1959 }
  0xdd   :  { %v1968_v42 = vsel %vm6417_vm7, %v1958_v40, %v1960_v41  ;;  %v1967_v43 = vsel %vm6417_vm7, %v1956_v39, %v1958_v40  ;;  %v2946_v41 = vadd.f32 0.5, %v2939_v36  ;;  %vm3017_vm12 = vcmp.lt.f32.partialorder %v2940_v37, 648.0 }
  0xde   :  { %2120 = vmatprep.subr.mxu0 %v1967_v43  ;;  %5429 = vmatpush3.msra.mxu1 %v1968_v42  ;;  %v2936_v42 = vadd.s32 512, %v5982_v34  ;;  %v2947_v43 = vadd.f32 0.5, %v2940_v37 }
  0xdf   :  { %2121 = vmatpush1.msra.mxu0 %v1966_v44  ;;  %5431 = vmatmul.mubr.msk.f32.vlgmr.msra.gmra.mrb[18].mxu1 %vm6422_vm1, %v1944_v38  ;;  %v2953_v44 = vmul.f32 0.0030864198, %v2946_v41 }
  0xe0   :  { %v2273_v45 = vpop.permute.xlu0 %2272  ;;  %5343 = vmatmul.mubr.msk.f32.vlgmr.msra.gmra.mrb[2].mxu0 %vm6422_vm1, %v1944_v38  ;;  %v2275_v46 = vpop.permute.xlu1 %2274  ;;  %2438 = vmatprep.mubr.f32.mxu1 %v5559_v2 }
  0xe1   :  { %v2288_v47 = vsel %vm6416_vm8, %v2273_v45, %v2275_v46  ;;  %2367 = vmatprep.mubr.f32.mxu0 %v5559_v2 }
  0xe2   :  { %2303 = vmatprep.subr.mxu0 %v2288_v47  ;;  %v2960_v47 = vfloor.f32 %v2953_v44 }
  0xe4   :  { %v2271_v48 = vpop.permute.xlu0 %2270  ;;  %v2277_v49 = vpop.permute.xlu1 %2276 }
  0xe5   :  { %v2287_v50 = vsel %vm6416_vm8, %v2271_v48, %v2273_v45  ;;  %v2289_v54 = vsel %vm6416_vm8, %v2275_v46, %v2277_v49  ;;  %v5987_v45 = vcvt.s32.f32 %v2936_v42  ;;  %v2954_v46 = vmul.f32 0.0030864198, %v2947_v43 }
  0xe6   :  { %2304 = vmatpush1.msra.mxu0 %v2287_v50  ;;  %v2967_v50 = vmul.f32 324.0, %v2960_v47  ;;  %v2935_v47 = vadd.s32 384, %v5982_v34 }
  0xe7   :  { %v2950_v48 = vadd.f32 0.5, %v5987_v45  ;;  %vm3020_vm4 = vcmp.lt.f32.partialorder %v5987_v45, 648.0 }
  0xe8   :  { %v2279_v51 = vpop.permute.xlu0 %2278  ;;  %v2269_v52 = vpop.permute.xlu1 %2268 }
  0xe9   :  { %v2290_v53 = vsel %vm6416_vm8, %v2277_v49, %v2279_v51  ;;  %5345 = vmatmul.mubr.msk.f32.vlgmr.msra.gmra.mrb[0].mxu0 %vm6422_vm1, %v2269_v52  ;;  %v2961_v49 = vfloor.f32 %v2954_v46 }
  0xea   :  { %2374 = vmatprep.subr.mxu1 %v2290_v53  ;;  %2509 = vmatprep.mubr.f32.mxu0 %v5559_v2 }
  0xeb   :  { %2375 = vmatpush1.msra.mxu1 %v2289_v54 }
  0xec   :  { %v2281_v55 = vpop.permute.xlu0 %2280  ;;  %5346 = vmatmul.mubr.msk.f32.vlgmr.msra.gmra.mrb[2].mxu1 %vm6422_vm1, %v2269_v52  ;;  %5433 = vmatprep.subr.mxu1 %v5559_v2 }
  0xed   :  { %v2291_v56 = vsel %vm6416_vm8, %v2279_v51, %v2281_v55  ;;  %v2283_v57 = vpop.permute.xlu1 %2282  ;;  %5435 = vmatprep.mubr.msk.f32.mxu1 %vm5575_vm2, %v5559_v2  ;;  %v2957_v51 = vmul.f32 0.0030864198, %v2950_v48 }
  0xee   :  { %v2292_v58 = vsel %vm6416_vm8, %v2281_v55, %v2283_v57 }
  0xef   :  { %2445 = vmatprep.subr.mxu0 %v2292_v58 }
  0xf0   :  { %2446 = vmatpush1.msra.mxu0 %v2291_v56  ;;  %v2285_v59 = vpop.permute.xlu0 %2284  ;;  %v2974_v56 = vsub.f32 %v2939_v36, %v2967_v50 }
  0xf1   :  { %v2293_v60 = vsel %vm6416_vm8, %v2283_v57, %v2285_v59  ;;  %5347 = vmatmul.mubr.msk.f32.vlgmr.msra.gmra.mrb[2].mxu0 %vm6422_vm1, %v2269_v52  ;;  %v2598_v61 = vpop.permute.xlu1 %2597  ;;  %v2964_v57 = vfloor.f32 %v2957_v51  ;;  %v2934_v59 = vadd.s32 256, %v5982_v34 }
  0xf2   :  { %5434 = vmatpush3.msra.mxu1 %v2293_v60  ;;  %2692 = vmatprep.mubr.f32.mxu0 %v5559_v2  ;;  %v2981_v60 = vadd.f32 0.5, %v2974_v56 }
  0xf3   :  { %5436 = vmatmul.mubr.msk.f32.vlgmr.msra.gmra.mrb[20].mxu1 %vm6422_vm1, %v2269_v52  ;;  %v2968_v52 = vmul.f32 324.0, %v2961_v49 }
  0xf4   :  { %v2600_v62 = vpop.permute.xlu0 %2599  ;;  %2763 = vmatprep.mubr.f32.mxu1 %v5559_v2 }
  0xf5   :  { %v2596_v63 = vpop.permute.xlu1 %2595  ;;  %v2613_v0 = vsel %vm6415_vm9, %v2598_v61, %v2600_v62  ;;  %v2975_v58 = vsub.f32 %v2940_v37, %v2968_v52 }
  0xf6   :  { %v2612_v1 = vsel %vm6415_vm9, %v2596_v63, %v2598_v61  ;;  %2628 = vmatprep.subr.mxu0 %v2613_v0  ;;  %v2971_v61 = vmul.f32 324.0, %v2964_v57  ;;  %v5991_v63 = vcvt.s32.f32 %v2934_v59  ;;  %v2988_v0 = vmul.f32 0.055555556, %v2981_v60 }
  0xf7   :  { %2629 = vmatpush1.msra.mxu0 %v2612_v1 }
  0xf8   :  { %v2602_v3 = vpop.permute.xlu0 %2601  ;;  %v2978_v1 = vsub.f32 %v5987_v45, %v2971_v61 }
  0xf9   :  { %v2614_v4 = vsel %vm6415_vm9, %v2600_v62, %v2602_v3  ;;  %v2604_v5 = vpop.permute.xlu1 %2603  ;;  %v2982_v62 = vadd.f32 0.5, %v2975_v58 }
  0xfa   :  { %v2615_v6 = vsel %vm6415_vm9, %v2602_v3, %v2604_v5 }
  0xfb   :  { %2699 = vmatprep.subr.mxu1 %v2615_v6  ;;  %v2989_v3 = vmul.f32 0.055555556, %v2982_v62  ;;  %v2985_v6 = vadd.f32 0.5, %v2978_v1 }
  0xfc   :  { %2700 = vmatpush1.msra.mxu1 %v2614_v4  ;;  %v2594_v7 = vpop.permute.xlu0 %2593  ;;  %v2948_v4 = vadd.f32 0.5, %v5991_v63 }
  0xfd   :  { %v2606_v8 = vpop.permute.xlu1 %2605  ;;  %5349 = vmatmul.mubr.msk.f32.vlgmr.msra.gmra.mrb[0].mxu0 %vm6422_vm1, %v2594_v7  ;;  %5350 = vmatmul.mubr.msk.f32.vlgmr.msra.gmra.mrb[2].mxu1 %vm6422_vm1, %v2594_v7 }
  0xfe   :  { %5438 = vmatprep.subr.mxu1 %v5559_v2  ;;  %5440 = vmatprep.mubr.msk.f32.mxu1 %vm5575_vm2, %v5559_v2  ;;  %v2616_v9 = vsel %vm6415_vm9, %v2604_v5, %v2606_v8  ;;  %v2995_v5 = vfloor.f32 %v2988_v0 }
  0xff   :  { %2834 = vmatprep.mubr.f32.mxu0 %v5559_v2 }
 0x100   :  { %v2608_v10 = vpop.permute.xlu0 %2607  ;;  %vm3023_vm11 = vcmp.ge.f32.partialorder %v2995_v5, 2.0  ;;  %vm3037_vm15 = vcmp.lt.f32.partialorder %v2995_v5, 16.0 }
 0x101   :  { %v2610_v11 = vpop.permute.xlu1 %2609  ;;  %v2617_v12 = vsel %vm6415_vm9, %v2606_v8, %v2608_v10  ;;  %v2937_v8 = vadd.s32 640, %v5982_v34  ;;  %vm3030_vm14 = vmand %vm3016_vm10, %vm3023_vm11 }
 0x102   :  { %v2618_v13 = vsel %vm6415_vm9, %v2608_v10, %v2610_v11  ;;  %2770 = vmatprep.subr.mxu0 %v2617_v12  ;;  %v3002_v10 = vmul.f32 18.0, %v2995_v5  ;;  %v2992_v11 = vmul.f32 0.055555556, %v2985_v6  ;;  %vm3044_vm8 = vmand %vm3030_vm14, %vm3037_vm15  ;;  %vm3018_vm14 = vcmp.lt.f32.partialorder %v5991_v63, 648.0 }
 0x103   :  { %5439 = vmatpush3.msra.mxu1 %v2618_v13  ;;  %2771 = vmatpush1.msra.mxu0 %v2616_v9  ;;  %v2955_v9 = vmul.f32 0.0030864198, %v2948_v4  ;;  %v5996_v13 = vcvt.s32.f32 %v2937_v8 }
 0x104   :  { %5441 = vmatmul.mubr.msk.f32.vlgmr.msra.gmra.mrb[22].mxu1 %vm6422_vm1, %v2594_v7  ;;  %5351 = vmatmul.mubr.msk.f32.vlgmr.msra.gmra.mrb[2].mxu0 %vm6422_vm1, %v2594_v7  ;;  %v2996_v7 = vfloor.f32 %v2989_v3 }
 0x105   :  { %3188 = vmatprep.mubr.f32.mxu0 %v5559_v2  ;;  %3259 = vmatprep.mubr.f32.mxu1 %v5559_v2 }
 0x106   :  { %v3003_v12 = vmul.f32 18.0, %v2996_v7  ;;  %vm3024_vm13 = vcmp.ge.f32.partialorder %v2996_v7, 2.0  ;;  %vm3038_vm9 = vcmp.lt.f32.partialorder %v2996_v7, 16.0 }
 0x107   :  { %vm3031_vm2 = vmand %vm3017_vm12, %vm3024_vm13 }
 0x108   :  { %vm3045_vm6 = vmand %vm3031_vm2, %vm3038_vm9 }
 0x112   :  { %v6013_v42 = vpop.permute.xlu0 %2921 }
 0x15b   :  { %v354_v15 = vpop.f32.mrb[6].mxu1 }
 0x15c   :  { %v5402_v16 = vpop.f32.mrb[7].mxu1 }
 0x15d   :  { %v2962_v16 = vfloor.f32 %v2955_v9 }
 0x15f   :  { %v5974_v17 = vpop.f32.mrb[0].mxu1 }
 0x160   :  { %v5976_v18 = vpop.f32.mrb[1].mxu1 }
 0x167   :  { %v5978_v19 = vpop.f32.mrb[4].mxu1 }
 0x168   :  { %v5980_v20 = vpop.f32.mrb[5].mxu1 }
 0x16b   :  { %v639_v21 = vpop.f32.mrb[8].mxu1 }
 0x16c   :  { %v640_v22 = vadd.f32 %v639_v21, %v354_v15  ;;  %v5407_v23 = vpop.f32.mrb[9].mxu1 }
 0x16d   :  { %v3009_v23 = vsub.f32 %v2974_v56, %v3002_v10 }
 0x16f   :  { %vm3051_vm7 = vcmp.ge.f32.partialorder %v3009_v23, 2.0  ;;  %vm3065_vm10 = vcmp.lt.f32.partialorder %v3009_v23, 16.0 }
 0x170   :  { %vm3058_vm1 = vmand %vm3044_vm8, %vm3051_vm7 }
 0x171   :  { %vm3072_vm7 = vmand %vm3058_vm1, %vm3065_vm10 }
 0x173   :  { %v957_v24 = vpop.f32.mrb[10].mxu1 }
 0x174   :  { %v967_v25 = vadd.f32 %v957_v24, %v640_v22  ;;  %v5412_v26 = vpop.f32.mrb[11].mxu1  ;;  %v2999_v24 = vfloor.f32 %v2992_v11 }
 0x175   :  { %v2951_v26 = vadd.f32 0.5, %v5996_v13 }
 0x176   :  { %vm3027_vm3 = vcmp.ge.f32.partialorder %v2999_v24, 2.0  ;;  %vm3041_vm13 = vcmp.lt.f32.partialorder %v2999_v24, 16.0 }
 0x177   :  { %vm3034_vm9 = vmand %vm3020_vm4, %vm3027_vm3 }
 0x178   :  { %vm3048_vm3 = vmand %vm3034_vm9, %vm3041_vm13 }
 0x17e   :  { %v1282_v27 = vpop.f32.mrb[12].mxu1 }
 0x17f   :  { %v1292_v28 = vadd.f32 %v1282_v27, %v967_v25  ;;  %v5417_v29 = vpop.f32.mrb[13].mxu1  ;;  %v3010_v25 = vsub.f32 %v2975_v58, %v3003_v12  ;;  %v2969_v27 = vmul.f32 324.0, %v2962_v16 }
 0x180   :  { %v3006_v29 = vmul.f32 18.0, %v2999_v24 }
 0x181   :  { %vm3052_vm5 = vcmp.ge.f32.partialorder %v3010_v25, 2.0  ;;  %vm3066_vm12 = vcmp.lt.f32.partialorder %v3010_v25, 16.0 }
 0x182   :  { %vm6002_vm11 = vmand %vm3045_vm6, %vm3052_vm5  ;;  %v3013_v35 = vsub.f32 %v2978_v1, %v3006_v29 }
 0x183   :  { %vm3073_vm5 = vmand %vm6002_vm11, %vm3066_vm12 }
 0x184   :  { %vm3055_vm4 = vcmp.ge.f32.partialorder %v3013_v35, 2.0  ;;  %vm3069_vm6 = vcmp.lt.f32.partialorder %v3013_v35, 16.0 }
 0x185   :  { %vm3062_vm1 = vmand %vm3048_vm3, %vm3055_vm4 }
 0x186   :  { %vm3076_vm8 = vmand %vm3062_vm1, %vm3069_vm6 }
 0x18e   :  { %v1607_v30 = vpop.f32.mrb[14].mxu1 }
 0x18f   :  { %v1617_v31 = vadd.f32 %v1607_v30, %v1292_v28  ;;  %v5422_v32 = vpop.f32.mrb[15].mxu1  ;;  %v2938_v28 = vadd.s32 768, %v5982_v34  ;;  %v2958_v30 = vmul.f32 0.0030864198, %v2951_v26 }
 0x191   :  { %v6006_v33 = vcvt.s32.f32 %v2938_v28 }
 0x193   :  { %v2952_v46 = vadd.f32 0.5, %v6006_v33 }
 0x195   :  { %v2959_v52 = vmul.f32 0.0030864198, %v2952_v46  ;;  %v5295_v46 = vld [vmem:[%s6413_s4] sm:$0xff] }
 0x197   :  { %v2966_v62 = vfloor.f32 %v2959_v52 }
 0x1a2   :  { %v1932_v38 = vpop.f32.mrb[16].mxu1 }
 0x1a3   :  { %v1942_v39 = vadd.f32 %v1932_v38, %v1617_v31  ;;  %v5427_v40 = vpop.f32.mrb[17].mxu1  ;;  %v2976_v31 = vsub.f32 %v5991_v63, %v2969_v27  ;;  %v2965_v38 = vfloor.f32 %v2958_v30 }
 0x1a5   :  { %v2983_v43 = vadd.f32 0.5, %v2976_v31  ;;  %v2972_v48 = vmul.f32 324.0, %v2965_v38 }
 0x1a7   :  { %v2990_v50 = vmul.f32 0.055555556, %v2983_v43  ;;  %v2979_v58 = vsub.f32 %v5996_v13, %v2972_v48 }
 0x1a9   :  { %v2997_v60 = vfloor.f32 %v2990_v50  ;;  %v2986_v3 = vadd.f32 0.5, %v2979_v58 }
 0x1ab   :  { %vm3025_vm15 = vcmp.ge.f32.partialorder %v2997_v60, 2.0  ;;  %v2993_v5 = vmul.f32 0.055555556, %v2986_v3  ;;  %vm3039_vm10 = vcmp.lt.f32.partialorder %v2997_v60, 16.0 }
 0x1ac   :  { %vm3032_vm2 = vmand %vm3018_vm14, %vm3025_vm15 }
 0x1ad   :  { %v3000_v9 = vfloor.f32 %v2993_v5  ;;  %vm3046_vm11 = vmand %vm3032_vm2, %vm3039_vm10  ;;  %vm3022_vm2 = vcmp.lt.f32.partialorder %v6006_v33, 648.0 }
 0x1af   :  { %v3007_v11 = vmul.f32 18.0, %v3000_v9  ;;  %vm3042_vm1 = vcmp.lt.f32.partialorder %v3000_v9, 16.0 }
 0x1b2   :  { %v2257_v53 = vpop.f32.mrb[18].mxu1 }
 0x1b3   :  { %v2267_v54 = vadd.f32 %v2257_v53, %v1942_v39  ;;  %v5432_v55 = vpop.f32.mrb[19].mxu1 }
 0x1c6   :  { %v2582_v15 = vpop.f32.mrb[20].mxu1 }
 0x1c7   :  { %v2592_v21 = vadd.f32 %v2582_v15, %v2267_v54  ;;  %v5437_v22 = vpop.f32.mrb[21].mxu1  ;;  %v6031_v54 = vcvt.s32.f32 %v2935_v47 }
 0x1c9   :  { %v2949_v0 = vadd.f32 0.5, %v6031_v54 }
 0x1cb   :  { %v2956_v4 = vmul.f32 0.0030864198, %v2949_v0 }
 0x1cd   :  { %v2963_v8 = vfloor.f32 %v2956_v4 }
 0x1cf   :  { %v2970_v10 = vmul.f32 324.0, %v2963_v8 }
 0x1d0   :  { %v2694_v36 = vpop.f32.mrb[0].mxu0  ;;  %v6008_v37 = vpop.f32.mrb[2].mxu1 }
 0x1d1   :  { %v5443_v39 = vadd.f32 %v2694_v36, %v5974_v17  ;;  %v2696_v40 = vpop.f32.mrb[1].mxu0  ;;  %v6011_v41 = vpop.f32.mrb[3].mxu1  ;;  %v2926_v15 = vadd.f32 %v6013_v42, %v6008_v37  ;;  %v2977_v16 = vsub.f32 %v6031_v54, %v2970_v10 }
 0x1d2   :  { %v5444_v44 = vadd.f32 %v2696_v40, %v5976_v18  ;;  %v2927_v35 = vadd.f32 %v6013_v42, %v6011_v41  ;;  %v6140_v37 = vpop.permute.xlu1 %3087 }
 0x1d3   :  { %v2924_v45 = vadd.f32 %v5443_v39, %v6013_v42  ;;  %v2984_v23 = vadd.f32 0.5, %v2977_v16 }
 0x1d4   :  { %v2925_v17 = vadd.f32 %v5444_v44, %v6013_v42 }
 0x1d5   :  { %v6023_v49 = vsel %vm3072_vm7, %v2924_v45, 0.0  ;;  %vm3021_vm7 = vcmp.lt.f32.partialorder %v5996_v13, 648.0  ;;  %v2991_v25 = vmul.f32 0.055555556, %v2984_v23 }
 0x1d6   :  { %v6025_v51 = vsel %vm3073_vm5, %v2925_v17, 0.0  ;;  %3096 = vrot.lane.b32.xlu0 %v6023_v49, %s5560_s22  ;;  %vm3028_vm5 = vcmp.ge.f32.partialorder %v3000_v9, 2.0  ;;  %v6148_v38 = vpop.permute.xlu1 %3552 }
 0x1d7   :  { %v2907_v18 = vpop.f32.mrb[22].mxu1  ;;  %3098 = vrot.lane.b32.xlu1 %v6025_v51, %s5560_s22  ;;  %v2836_v53 = vpop.f32.mrb[2].mxu0  ;;  %vm3035_vm4 = vmand %vm3021_vm7, %vm3028_vm5  ;;  %v2998_v28 = vfloor.f32 %v2991_v25  ;;  %vm3019_vm5 = vcmp.lt.f32.partialorder %v6031_v54, 648.0 }
 0x1d8   :  { %v6033_v34 = vadd.f32 %v2907_v18, %v2592_v21  ;;  %v5445_v55 = vadd.f32 %v2836_v53, %v5978_v19  ;;  %v5442_v56 = vpop.f32.mrb[23].mxu1  ;;  %v2838_v57 = vpop.f32.mrb[3].mxu0  ;;  %v3004_v19 = vmul.f32 18.0, %v2997_v60  ;;  %v3014_v21 = vsub.f32 %v2979_v58, %v3007_v11  ;;  %vm3049_vm6 = vmand %vm3035_vm4, %vm3042_vm1 }
 0x1d9   :  { %v5446_v59 = vadd.f32 %v2838_v57, %v5980_v20  ;;  %v2973_v20 = vmul.f32 324.0, %v2966_v62  ;;  %v3005_v30 = vmul.f32 18.0, %v2998_v28 }
 0x1da   :  { %v2928_v61 = vadd.f32 %v5445_v55, %v6013_v42  ;;  %3554 = vrot.lane.b32.xlu0 %v6023_v49, %s5562_s12  ;;  %v3011_v6 = vsub.f32 %v2976_v31, %v3004_v19  ;;  %vm3070_vm15 = vcmp.lt.f32.partialorder %v3014_v21, 16.0  ;;  %v2930_v32 = vadd.f32 %v6013_v42, %v6033_v34  ;;  %v6155_v39 = vpop.permute.xlu1 %3801 }
 0x1db   :  { %v2980_v7 = vsub.f32 %v6006_v33, %v2973_v20  ;;  %v2929_v26 = vadd.f32 %v5446_v59, %v6013_v42  ;;  %v3012_v31 = vsub.f32 %v2977_v16, %v3005_v30 }
 0x1dc   :  { %v6042_v1 = vsel %vm3076_vm8, %v2928_v61, 0.0  ;;  %vm3053_vm12 = vcmp.ge.f32.partialorder %v3011_v6, 2.0  ;;  %vm3067_vm13 = vcmp.lt.f32.partialorder %v3011_v6, 16.0  ;;  %vm3056_vm8 = vcmp.ge.f32.partialorder %v3014_v21, 2.0 }
 0x1dd   :  { %3104 = vrot.lane.b32.xlu1 %v6042_v1, %s5560_s22  ;;  %v2987_v63 = vadd.f32 0.5, %v2980_v7  ;;  %vm3060_vm9 = vmand %vm3046_vm11, %vm3053_vm12 }
 0x1de   :  { %3803 = vrot.lane.b32.xlu0 %v6023_v49, %s5564_s13  ;;  %vm3074_vm3 = vmand %vm3060_vm9, %vm3067_vm13  ;;  %v6162_v40 = vpop.permute.xlu1 %4050 }
 0x1df   :  { %v2994_v12 = vmul.f32 0.055555556, %v2987_v63  ;;  %v6070_v22 = vsel %vm3074_vm3, %v2926_v15, 0.0  ;;  %vm3063_vm14 = vmand %vm3049_vm6, %vm3056_vm8  ;;  %vm3026_vm3 = vcmp.ge.f32.partialorder %v2998_v28, 2.0  ;;  %vm3040_vm8 = vcmp.lt.f32.partialorder %v2998_v28, 16.0 }
 0x1e0   :  { %vm3077_vm11 = vmand %vm3063_vm14, %vm3070_vm15 }
 0x1e1   :  { %3562 = vrot.lane.b32.xlu1 %v6042_v1, %s5562_s12  ;;  %v3001_v13 = vfloor.f32 %v2994_v12  ;;  %v6082_v29 = vsel %vm3077_vm11, %v2929_v26, 0.0  ;;  %vm3033_vm6 = vmand %vm3019_vm5, %vm3026_vm3  ;;  %vm3068_vm11 = vcmp.lt.f32.partialorder %v3012_v31, 16.0  ;;  %vm6428_vm5 = vcmask 1031168  }
 0x1e2   :  { %4052 = vrot.lane.b32.xlu0 %v6023_v49, %s5566_s15  ;;  %vm3047_vm15 = vmand %vm3033_vm6, %vm3040_vm8  ;;  %v6169_v41 = vpop.permute.xlu1 %4299 }
 0x1e3   :  { %v3008_v24 = vmul.f32 18.0, %v3001_v13  ;;  %vm3029_vm10 = vcmp.ge.f32.partialorder %v3001_v13, 2.0  ;;  %vm3043_vm9 = vcmp.lt.f32.partialorder %v3001_v13, 16.0  ;;  %vm6429_vm3 = vmmov %vm6428_vm5 }
 0x1e4   :  { %vm3036_vm12 = vmand %vm3022_vm2, %vm3029_vm10  ;;  %vm3054_vm2 = vcmp.ge.f32.partialorder %v3012_v31, 2.0 }
 0x1e5   :  { %3811 = vrot.lane.b32.xlu1 %v6042_v1, %s5564_s13  ;;  %v3015_v27 = vsub.f32 %v2980_v7, %v3008_v24  ;;  %vm3050_vm13 = vmand %vm3036_vm12, %vm3043_vm9  ;;  %vm6425_vm9 = vcmask 64512  }
 0x1e6   :  { %4301 = vrot.lane.b32.xlu0 %v6023_v49, %s5568_s17  ;;  %vm3061_vm10 = vmand %vm3047_vm15, %vm3054_vm2  ;;  %vm6436_vm15 = vcmask 900096  }
 0x1e7   :  { %vm3057_vm7 = vcmp.ge.f32.partialorder %v3015_v27, 2.0  ;;  %vm3071_vm1 = vcmp.lt.f32.partialorder %v3015_v27, 16.0  ;;  %vm3075_vm12 = vmand %vm3061_vm10, %vm3068_vm11 }
 0x1e8   :  { %vm3064_vm4 = vmand %vm3050_vm13, %vm3057_vm7  ;;  %v6108_v36 = vsel %vm3075_vm12, %v2927_v35, 0.0 }
 0x1e9   :  { %4060 = vrot.lane.b32.xlu1 %v6042_v1, %s5566_s15  ;;  %vm3078_vm14 = vmand %vm3064_vm4, %vm3071_vm1 }
 0x1ea   :  { %3556 = vrot.lane.b32.xlu0 %v6025_v51, %s5562_s12  ;;  %v3085_v33 = vsel %vm3078_vm14, %v2930_v32, 0.0  ;;  %vm6426_vm13 = vmmov %vm6425_vm9 }
 0x1eb   :  { %vm6427_vm7 = vmmov %vm6425_vm9 }
 0x1ec   :  { %vm6430_vm4 = vmmov %vm6427_vm7 }
 0x1ed   :  { %4309 = vrot.lane.b32.xlu1 %v6042_v1, %s5568_s17  ;;  %vm6431_vm1 = vmmov %vm6430_vm4 }
 0x1ee   :  { %3805 = vrot.lane.b32.xlu0 %v6025_v51, %s5564_s13  ;;  %vm6433_vm6 = vmmov %vm6429_vm3 }
 0x1ef   :  { %vm6434_vm8 = vmmov %vm6429_vm3 }
 0x1f0   :  { %vm6435_vm14 = vmmov %vm6429_vm3 }
 0x1f1   :  { %3100 = vrot.lane.b32.xlu1 %v6070_v22, %s5560_s22  ;;  %vm6437_vm2 = vmmov %vm6436_vm15 }
 0x1f2   :  { %4054 = vrot.lane.b32.xlu0 %v6025_v51, %s5566_s15  ;;  %vm6439_vm11 = vmmov %vm6429_vm3 }
 0x1f5   :  { %3558 = vrot.lane.b32.xlu1 %v6070_v22, %s5562_s12 }
 0x1f6   :  { %4303 = vrot.lane.b32.xlu0 %v6025_v51, %s5568_s17 }
 0x1f9   :  { %3807 = vrot.lane.b32.xlu1 %v6070_v22, %s5564_s13 }
 0x1fa   :  { %3106 = vrot.lane.b32.xlu0 %v6082_v29, %s5560_s22 }
 0x1fd   :  { %4056 = vrot.lane.b32.xlu1 %v6070_v22, %s5566_s15 }
 0x1fe   :  { %3564 = vrot.lane.b32.xlu0 %v6082_v29, %s5562_s12 }
 0x201   :  { %4305 = vrot.lane.b32.xlu1 %v6070_v22, %s5568_s17 }
 0x202   :  { %3813 = vrot.lane.b32.xlu0 %v6082_v29, %s5564_s13 }
 0x205   :  { %3108 = vrot.lane.b32.xlu1 %v3085_v33, %s5560_s22 }
 0x206   :  { %4062 = vrot.lane.b32.xlu0 %v6082_v29, %s5566_s15 }
 0x209   :  { %4554 = vrot.lane.b32.xlu1 %v6070_v22, %s5570_s19 }
 0x20a   :  { %4311 = vrot.lane.b32.xlu0 %v6082_v29, %s5568_s17 }
 0x20d   :  { %4548 = vrot.lane.b32.xlu1 %v5962_v14, %s5571_s20 }
 0x20e   :  { %3102 = vrot.lane.b32.xlu0 %v6108_v36, %s5560_s22 }
 0x211   :  { %4558 = vrot.lane.b32.xlu1 %v6042_v1, %s5570_s19 }
 0x212   :  { %4552 = vrot.lane.b32.xlu0 %v6025_v51, %s5570_s19 }
 0x215   :  { %3566 = vrot.lane.b32.xlu1 %v3085_v33, %s5562_s12 }
 0x216   :  { %3560 = vrot.lane.b32.xlu0 %v6108_v36, %s5562_s12 }
 0x219   :  { %4803 = vrot.lane.b32.xlu1 %v6070_v22, %s5572_s21 }
 0x21a   :  { %3809 = vrot.lane.b32.xlu0 %v6108_v36, %s5564_s13 }
 0x21d   :  { %3815 = vrot.lane.b32.xlu1 %v3085_v33, %s5564_s13 }
 0x21e   :  { %4058 = vrot.lane.b32.xlu0 %v6108_v36, %s5566_s15 }
 0x221   :  { %4797 = vrot.lane.b32.xlu1 %v5962_v14, %s5573_s23 }
 0x222   :  { %4307 = vrot.lane.b32.xlu0 %v6108_v36, %s5568_s17 }
 0x225   :  { %4064 = vrot.lane.b32.xlu1 %v3085_v33, %s5566_s15 }
 0x226   :  { %4550 = vrot.lane.b32.xlu0 %v6023_v49, %s5570_s19 }
 0x229   :  { %4807 = vrot.lane.b32.xlu1 %v6042_v1, %s5572_s21 }
 0x22a   :  { %4556 = vrot.lane.b32.xlu0 %v6108_v36, %s5570_s19 }
 0x22d   :  { %4313 = vrot.lane.b32.xlu1 %v3085_v33, %s5568_s17 }
 0x22e   :  { %4560 = vrot.lane.b32.xlu0 %v6082_v29, %s5570_s19 }
 0x231   :  { %5052 = vrot.lane.b32.xlu1 %v6070_v22, %s5574_s24 }
 0x232   :  { %4801 = vrot.lane.b32.xlu0 %v6025_v51, %s5572_s21 }
 0x235   :  { %4562 = vrot.lane.b32.xlu1 %v3085_v33, %s5570_s19 }
 0x236   :  { %4799 = vrot.lane.b32.xlu0 %v6023_v49, %s5572_s21 }
 0x239   :  { %5046 = vrot.lane.b32.xlu1 %v5962_v14, %s5577_s25 }
 0x23a   :  { %4805 = vrot.lane.b32.xlu0 %v6108_v36, %s5572_s21 }
 0x23d   :  { %4811 = vrot.lane.b32.xlu1 %v3085_v33, %s5572_s21 }
 0x23e   :  { %4809 = vrot.lane.b32.xlu0 %v6082_v29, %s5572_s21 }
 0x241   :  { %5056 = vrot.lane.b32.xlu1 %v6042_v1, %s5574_s24 }
 0x242   :  { %5050 = vrot.lane.b32.xlu0 %v6025_v51, %s5574_s24 }
 0x245   :  { %5060 = vrot.lane.b32.xlu1 %v3085_v33, %s5574_s24 }
 0x246   :  { %5048 = vrot.lane.b32.xlu0 %v6023_v49, %s5574_s24 }
 0x248   :  { %v3097_v42 = vpop.permute.xlu0 %3096 }
 0x249   :  { %v3099_v43 = vpop.permute.xlu1 %3098 }
 0x24a   :  { %5054 = vrot.lane.b32.xlu0 %v6108_v36, %s5574_s24  ;;  %v3110_v58 = vsel %vm57_vm0, %v3097_v42, %v3099_v43 }
 0x24c   :  { %v3555_v44 = vpop.permute.xlu0 %3554 }
 0x24e   :  { %5058 = vrot.lane.b32.xlu0 %v6082_v29, %s5574_s24 }
 0x24f   :  { %v3105_v45 = vpop.permute.xlu1 %3104 }
 0x250   :  { %v6180_v17 = vpop.permute.xlu0 %3803 }
 0x252   :  { %5298 = vperm.xlu0 %5558, %v5295_v46  }
 0x253   :  { %v6182_v47 = vpop.permute.xlu1 %3562 }
 0x254   :  { %v6184_v48 = vpop.permute.xlu0 %4052 }
 0x257   :  { %v6186_v50 = vpop.permute.xlu1 %3811 }
 0x258   :  { %v6188_v18 = vpop.permute.xlu0 %4301 }
 0x25b   :  { %v6190_v52 = vpop.permute.xlu1 %4060 }
 0x25c   :  { %v3557_v53 = vpop.permute.xlu0 %3556 }
 0x25d   :  { %v3568_v12 = vsel %vm6429_vm3, %v3555_v44, %v3557_v53  ;;  %vm6445_vm3 = vcmask 891904  }
 0x25f   :  { %v6192_v54 = vpop.permute.xlu1 %4309 }
 0x260   :  { %v6194_v34 = vpop.permute.xlu0 %3805 }
 0x261   :  { %v3817_v25 = vsel %vm6437_vm2, %v6180_v17, %v6194_v34 }
 0x263   :  { %v3101_v55 = vpop.permute.xlu1 %3100 }
 0x264   :  { %v6196_v56 = vpop.permute.xlu0 %4054  ;;  %v3111_v57 = vsel %vm57_vm0, %v3099_v43, %v3101_v55 }
 0x265   :  { %3124 = vmatprep.subr.mxu0 %v3111_v57 }
 0x266   :  { %3125 = vmatpush1.msra.mxu0 %v3110_v58 }
 0x267   :  { %5353 = vmatmul.mubr.msk.f32.vlgmr.msra.gmra.mrb[4].mxu0 %vm6425_vm9, %v6140_v37  ;;  %v3559_v59 = vpop.permute.xlu1 %3558  ;;  %vm6441_vm9 = vmmov %vm6437_vm2 }
 0x268   :  { %v6202_v60 = vpop.permute.xlu0 %4303  ;;  %3330 = vmatprep.mubr.f32.mxu0 %v5559_v2 }
 0x26b   :  { %v6205_v61 = vpop.permute.xlu1 %3807 }
 0x26c   :  { %v3107_v62 = vpop.permute.xlu0 %3106 }
 0x26d   :  { %v3114_v7 = vsel %vm57_vm0, %v3105_v45, %v3107_v62 }
 0x26f   :  { %v6207_v0 = vpop.permute.xlu1 %4056 }
 0x270   :  { %v3565_v3 = vpop.permute.xlu0 %3564  ;;  %v4067_v33 = vsel %vm6445_vm3, %v6196_v56, %v6207_v0 }
 0x271   :  { %v3572_v23 = vsel %vm6434_vm8, %v6182_v47, %v3565_v3  ;;  %vm6450_vm8 = vmmov %vm6445_vm3 }
 0x273   :  { %v6209_v19 = vpop.permute.xlu1 %4305 }
 0x274   :  { %v6211_v20 = vpop.permute.xlu0 %3813 }
 0x277   :  { %v3109_v4 = vpop.permute.xlu1 %3108 }
 0x278   :  { %v6213_v5 = vpop.permute.xlu0 %4062  ;;  %v3115_v6 = vsel %vm57_vm0, %v3107_v62, %v3109_v4 }
 0x279   :  { %3266 = vmatprep.subr.mxu0 %v3115_v6 }
 0x27a   :  { %3267 = vmatpush1.msra.mxu0 %v3114_v7 }
 0x27b   :  { %5355 = vmatmul.mubr.msk.f32.vlgmr.msra.gmra.mrb[6].mxu0 %vm6426_vm13, %v6140_v37  ;;  %3339 = vmatprep.subr.mxu0 %v6025_v51  ;;  %v6220_v8 = vpop.permute.xlu1 %4554  ;;  %v3569_v51 = vsel %vm6428_vm5, %v3557_v53, %v3559_v59  ;;  %vm6444_vm5 = vmmov %vm6437_vm2 }
 0x27c   :  { %v6222_v9 = vpop.permute.xlu0 %4311  ;;  %3340 = vmatpush1.msra.mxu0 %v6023_v49  ;;  %3403 = vmatprep.mubr.f32.mxu0 %v5559_v2 }
 0x27d   :  { %3481 = vmatprep.subr.mxu0 %v6082_v29 }
 0x27f   :  { %5356 = vmatmul.mubr.msk.f32.vlgmr.msra.gmra.mrb[4].mxu0 %vm6427_vm7, %v5962_v14  ;;  %v6229_v63 = vpop.permute.xlu1 %4548  ;;  %vm6443_vm7 = vmmov %vm6437_vm2 }
 0x280   :  { %3482 = vmatpush1.msra.mxu0 %v6042_v1  ;;  %v3103_v10 = vpop.permute.xlu0 %3102  ;;  %3545 = vmatprep.mubr.f32.mxu0 %v5559_v2 }
 0x281   :  { %v3112_v11 = vsel %vm57_vm0, %v3101_v55, %v3103_v10  ;;  %3582 = vmatprep.subr.mxu0 %v3569_v51  ;;  %v3113_v49 = vsel %vm57_vm0, %v3103_v10, %v3105_v45  ;;  %vm6432_vm0 = vmmov %vm6431_vm1 }
 0x282   :  { %3195 = vmatprep.subr.mxu1 %v3113_v49  ;;  %vm6438_vm10 = vmmov %vm6432_vm0 }
 0x283   :  { %3196 = vmatpush1.msra.mxu1 %v3112_v11  ;;  %5358 = vmatmul.mubr.msk.f32.vlgmr.msra.gmra.mrb[6].mxu0 %vm6430_vm4, %v5962_v14  ;;  %v6239_v15 = vpop.permute.xlu1 %4558  ;;  %vm6440_vm12 = vmmov %vm6432_vm0 }
 0x284   :  { %3583 = vmatpush1.msra.mxu0 %v3568_v12  ;;  %v6241_v1 = vpop.permute.xlu0 %4552  ;;  %5354 = vmatmul.mubr.msk.f32.vlgmr.msra.gmra.mrb[24].mxu1 %vm6431_vm1, %v6140_v37  ;;  %vm6442_vm13 = vmmov %vm6432_vm0 }
 0x285   :  { %3410 = vmatprep.subr.mxu1 %v6108_v36  ;;  %3646 = vmatprep.mubr.f32.mxu0 %v5559_v2  ;;  %vm6446_vm4 = vmmov %vm6445_vm3 }
 0x286   :  { %3411 = vmatpush1.msra.mxu1 %v6070_v22  ;;  %3474 = vmatprep.mubr.f32.mxu1 %v5559_v2  ;;  %v3818_v22 = vsel %vm6436_vm15, %v6194_v34, %v6205_v61  ;;  %v4066_v35 = vsel %vm6446_vm4, %v6184_v48, %v6196_v56  ;;  %vm6447_vm1 = vmmov %vm6432_vm0 }
 0x287   :  { %5359 = vmatmul.mubr.msk.f32.vlgmr.msra.gmra.mrb[4].mxu0 %vm6432_vm0, %v6148_v38  ;;  %v3567_v16 = vpop.permute.xlu1 %3566  ;;  %vm6448_vm0 = vmmov %vm6437_vm2 }
 0x288   :  { %v3561_v21 = vpop.permute.xlu0 %3560  ;;  %v3573_v13 = vsel %vm6433_vm6, %v3565_v3, %v3567_v16  ;;  %3788 = vmatprep.mubr.f32.mxu0 %v5559_v2  ;;  %vm6449_vm6 = vmmov %vm6447_vm1 }
 0x289   :  { %3724 = vmatprep.subr.mxu0 %v3573_v13  ;;  %v3571_v24 = vsel %vm6435_vm14, %v3561_v21, %v6182_v47  ;;  %v3570_v27 = vsel %vm6439_vm11, %v3559_v59, %v3561_v21  ;;  %vm6451_vm14 = vmmov %vm6447_vm1 }
 0x28a   :  { %3653 = vmatprep.subr.mxu1 %v3571_v24  ;;  %3725 = vmatpush1.msra.mxu0 %v3572_v23  ;;  %vm6452_vm15 = vmmov %vm6445_vm3 }
 0x28b   :  { %5361 = vmatmul.mubr.msk.f32.vlgmr.msra.gmra.mrb[6].mxu0 %vm6438_vm10, %v6148_v38  ;;  %3831 = vmatprep.subr.mxu0 %v3818_v22  ;;  %v6265_v26 = vpop.permute.xlu1 %4803  ;;  %vm6453_vm2 = vmmov %vm6445_vm3  ;;  %vm6454_vm10 = vcmask 883712  }
 0x28c   :  { %v3810_v28 = vpop.permute.xlu0 %3809  ;;  %5357 = vmatmul.mubr.msk.f32.vlgmr.msra.gmra.mrb[24].mxu1 %vm6440_vm12, %v5962_v14  ;;  %3832 = vmatpush1.msra.mxu0 %v3817_v25  ;;  %v3821_v14 = vsel %vm6444_vm5, %v6186_v50, %v6211_v20  ;;  %v4316_v17 = vsel %vm6454_vm10, %v6202_v60, %v6209_v19  ;;  %vm6455_vm11 = vmmov %vm6454_vm10 }
 0x28d   :  { %3654 = vmatpush1.msra.mxu1 %v3570_v27  ;;  %3895 = vmatprep.mubr.f32.mxu0 %v5559_v2  ;;  %v3820_v29 = vsel %vm6441_vm9, %v3810_v28, %v6186_v50  ;;  %v3819_v37 = vsel %vm6448_vm0, %v6205_v61, %v3810_v28  ;;  %v4315_v47 = vsel %vm6455_vm11, %v6188_v18, %v6202_v60  ;;  %vm6456_vm12 = vmmov %vm6447_vm1 }
 0x28e   :  { %3902 = vmatprep.subr.mxu1 %v3820_v29  ;;  %3717 = vmatprep.mubr.f32.mxu1 %v5559_v2  ;;  %vm6457_vm9 = vmmov %vm6453_vm2 }
 0x28f   :  { %5362 = vmatmul.mubr.msk.f32.vlgmr.msra.gmra.mrb[4].mxu0 %vm6442_vm13, %v6155_v39  ;;  %v3816_v30 = vpop.permute.xlu1 %3815  ;;  %vm6458_vm13 = vmmov %vm6447_vm1 }
 0x290   :  { %v4059_v31 = vpop.permute.xlu0 %4058  ;;  %v3822_v32 = vsel %vm6443_vm7, %v6211_v20, %v3816_v30  ;;  %4037 = vmatprep.mubr.f32.mxu0 %v5559_v2  ;;  %vm6459_vm7 = vmmov %vm6454_vm10 }
 0x291   :  { %3973 = vmatprep.subr.mxu0 %v3822_v32  ;;  %v4069_v43 = vsel %vm6450_vm8, %v4059_v31, %v6190_v52  ;;  %v4068_v50 = vsel %vm6457_vm9, %v6207_v0, %v4059_v31  ;;  %vm6460_vm5 = vmmov %vm6447_vm1 }
 0x292   :  { %3974 = vmatpush1.msra.mxu0 %v3821_v14  ;;  %vm6461_vm3 = vmmov %vm6459_vm7 }
 0x293   :  { %5364 = vmatmul.mubr.msk.f32.vlgmr.msra.gmra.mrb[6].mxu0 %vm6447_vm1, %v6155_v39  ;;  %4080 = vmatprep.subr.mxu0 %v4067_v33  ;;  %v6290_v36 = vpop.permute.xlu1 %4797  ;;  %vm6462_vm4 = vmmov %vm6461_vm3  ;;  %vm6463_vm1 = vcmask 752640  }
 0x294   :  { %v4308_v42 = vpop.permute.xlu0 %4307  ;;  %5360 = vmatmul.mubr.msk.f32.vlgmr.msra.gmra.mrb[24].mxu1 %vm6449_vm6, %v6148_v38  ;;  %4081 = vmatpush1.msra.mxu0 %v4066_v35  ;;  %v4070_v38 = vsel %vm6453_vm2, %v6190_v52, %v6213_v5  ;;  %v4565_v56 = vsel %vm6463_vm1, %v6241_v1, %v6220_v8  ;;  %vm6464_vm0 = vmmov %vm6463_vm1 }
 0x295   :  { %3903 = vmatpush1.msra.mxu1 %v3819_v37  ;;  %4144 = vmatprep.mubr.f32.mxu0 %v5559_v2  ;;  %v4318_v52 = vsel %vm6459_vm7, %v4308_v42, %v6192_v54  ;;  %vm6465_vm6 = vmmov %vm6460_vm5 }
 0x296   :  { %4151 = vmatprep.subr.mxu1 %v4069_v43  ;;  %3966 = vmatprep.mubr.f32.mxu1 %v5559_v2  ;;  %vm6466_vm8 = vmmov %vm6461_vm3 }
 0x297   :  { %5365 = vmatmul.mubr.msk.f32.vlgmr.msra.gmra.mrb[4].mxu0 %vm6451_vm14, %v6162_v40  ;;  %v4065_v44 = vpop.permute.xlu1 %4064  ;;  %v4317_v59 = vsel %vm6466_vm8, %v6209_v19, %v4308_v42  ;;  %vm6467_vm14 = vmmov %vm6460_vm5 }
 0x298   :  { %v4551_v45 = vpop.permute.xlu0 %4550  ;;  %v4071_v46 = vsel %vm6452_vm15, %v6213_v5, %v4065_v44  ;;  %4286 = vmatprep.mubr.f32.mxu0 %v5559_v2  ;;  %vm6468_vm15 = vmmov %vm6464_vm0 }
 0x299   :  { %4222 = vmatprep.subr.mxu0 %v4071_v46  ;;  %v4564_v57 = vsel %vm6464_vm0, %v4551_v45, %v6241_v1  ;;  %vm6469_vm2 = vmmov %vm6460_vm5 }
 0x29a   :  { %4223 = vmatpush1.msra.mxu0 %v4070_v38  ;;  %vm6470_vm10 = vmmov %vm6464_vm0 }
 0x29b   :  { %5367 = vmatmul.mubr.msk.f32.vlgmr.msra.gmra.mrb[6].mxu0 %vm6456_vm12, %v6162_v40  ;;  %4329 = vmatprep.subr.mxu0 %v4316_v17  ;;  %v4808_v48 = vpop.permute.xlu1 %4807  ;;  %vm6471_vm11 = vmmov %vm6464_vm0  ;;  %vm6472_vm12 = vcmask 744448  }
 0x29c   :  { %v4557_v53 = vpop.permute.xlu0 %4556  ;;  %5363 = vmatmul.mubr.msk.f32.vlgmr.msra.gmra.mrb[24].mxu1 %vm6458_vm13, %v6155_v39  ;;  %4330 = vmatpush1.msra.mxu0 %v4315_v47  ;;  %v4319_v39 = vsel %vm6462_vm4, %v6192_v54, %v6222_v9  ;;  %vm6473_vm9 = vmmov %vm6472_vm12 }
 0x29d   :  { %4152 = vmatpush1.msra.mxu1 %v4068_v50  ;;  %4393 = vmatprep.mubr.f32.mxu0 %v5559_v2  ;;  %v4567_v54 = vsel %vm6468_vm15, %v4557_v53, %v6239_v15  ;;  %vm6474_vm13 = vmmov %vm6469_vm2  ;;  %vm6484_vm15 = vcmask 736256  }
 0x29e   :  { %4400 = vmatprep.subr.mxu1 %v4318_v52  ;;  %4215 = vmatprep.mubr.f32.mxu1 %v5559_v2  ;;  %vm6475_vm7 = vmmov %vm6464_vm0 }
 0x29f   :  { %5368 = vmatmul.mubr.msk.f32.vlgmr.msra.gmra.mrb[4].mxu0 %vm6460_vm5, %v6169_v41  ;;  %v4314_v18 = vpop.permute.xlu1 %4313  ;;  %v4566_v4 = vsel %vm6475_vm7, %v6220_v8, %v4557_v53  ;;  %vm6476_vm5 = vmmov %vm6469_vm2 }
 0x2a0   :  { %v4561_v34 = vpop.permute.xlu0 %4560  ;;  %v4320_v55 = vsel %vm6461_vm3, %v6222_v9, %v4314_v18  ;;  %4535 = vmatprep.mubr.f32.mxu0 %v5559_v2  ;;  %vm6477_vm3 = vmmov %vm6473_vm9 }
 0x2a1   :  { %4471 = vmatprep.subr.mxu0 %v4320_v55  ;;  %vm6478_vm4 = vmmov %vm6469_vm2 }
 0x2a2   :  { %4472 = vmatpush1.msra.mxu0 %v4319_v39  ;;  %vm6479_vm1 = vmmov %vm6477_vm3 }
 0x2a3   :  { %5370 = vmatmul.mubr.msk.f32.vlgmr.msra.gmra.mrb[6].mxu0 %vm6465_vm6, %v6169_v41  ;;  %4578 = vmatprep.subr.mxu0 %v4565_v56  ;;  %v5053_v58 = vpop.permute.xlu1 %5052  ;;  %vm6480_vm0 = vmmov %vm6479_vm1 }
 0x2a4   :  { %v4802_v60 = vpop.permute.xlu0 %4801  ;;  %5366 = vmatmul.mubr.msk.f32.vlgmr.msra.gmra.mrb[24].mxu1 %vm6467_vm14, %v6162_v40  ;;  %4579 = vmatpush1.msra.mxu0 %v4564_v57  ;;  %v4568_v40 = vsel %vm6471_vm11, %v6239_v15, %v4561_v34  ;;  %vm6481_vm6 = vmmov %vm6480_vm0 }
 0x2a5   :  { %4401 = vmatpush1.msra.mxu1 %v4317_v59  ;;  %4642 = vmatprep.mubr.f32.mxu0 %v5559_v2  ;;  %v4814_v3 = vsel %vm6472_vm12, %v4802_v60, %v6265_v26  ;;  %vm6482_vm8 = vmmov %vm6469_vm2 }
 0x2a6   :  { %4649 = vmatprep.subr.mxu1 %v4567_v54  ;;  %4464 = vmatprep.mubr.f32.mxu1 %v5559_v2  ;;  %vm6483_vm14 = vmmov %vm6469_vm2 }
 0x2a7   :  { %5371 = vmatmul.mubr.msk.f32.vlgmr.msra.gmra.mrb[4].mxu0 %vm6469_vm2, %v6229_v63  ;;  %v4563_v61 = vpop.permute.xlu1 %4562  ;;  %vm6485_vm2 = vmmov %vm6484_vm15 }
 0x2a8   :  { %v4800_v62 = vpop.permute.xlu0 %4799  ;;  %v4569_v0 = vsel %vm6470_vm10, %v4561_v34, %v4563_v61  ;;  %4784 = vmatprep.mubr.f32.mxu0 %v5559_v2  ;;  %vm6486_vm10 = vmmov %vm6478_vm4 }
 0x2a9   :  { %4720 = vmatprep.subr.mxu0 %v4569_v0  ;;  %v4813_v19 = vsel %vm6473_vm9, %v4800_v62, %v4802_v60  ;;  %vm6487_vm11 = vmmov %vm6478_vm4 }
 0x2aa   :  { %4721 = vmatpush1.msra.mxu0 %v4568_v40  ;;  %vm6488_vm12 = vmmov %vm6485_vm2 }
 0x2ab   :  { %5373 = vmatmul.mubr.msk.f32.vlgmr.msra.gmra.mrb[6].mxu0 %vm6474_vm13, %v6229_v63  ;;  %4827 = vmatprep.subr.mxu0 %v4814_v3  ;;  %v5047_v20 = vpop.permute.xlu1 %5046  ;;  %vm6489_vm9 = vmmov %vm6485_vm2 }
 0x2ac   :  { %v4806_v5 = vpop.permute.xlu0 %4805  ;;  %5369 = vmatmul.mubr.msk.f32.vlgmr.msra.gmra.mrb[24].mxu1 %vm6476_vm5, %v6169_v41  ;;  %4828 = vmatpush1.msra.mxu0 %v4813_v19  ;;  %vm6490_vm13 = vmmov %vm6485_vm2 }
 0x2ad   :  { %4650 = vmatpush1.msra.mxu1 %v4566_v4  ;;  %4891 = vmatprep.mubr.f32.mxu0 %v5559_v2  ;;  %v4816_v6 = vsel %vm6477_vm3, %v4806_v5, %v4808_v48  ;;  %v4815_v10 = vsel %vm6481_vm6, %v6265_v26, %v4806_v5  ;;  %vm6491_vm7 = vmmov %vm6485_vm2 }
 0x2ae   :  { %4898 = vmatprep.subr.mxu1 %v4816_v6  ;;  %4713 = vmatprep.mubr.f32.mxu1 %v5559_v2  ;;  %vm6492_vm5 = vmmov %vm6478_vm4 }
 0x2af   :  { %5374 = vmatmul.mubr.msk.f32.vlgmr.msra.gmra.mrb[4].mxu0 %vm6478_vm4, %v6290_v36  ;;  %v4812_v7 = vpop.permute.xlu1 %4811  ;;  %vm6493_vm3 = vmmov %vm6478_vm4 }
 0x2b0   :  { %v4810_v9 = vpop.permute.xlu0 %4809  ;;  %5033 = vmatprep.mubr.f32.mxu0 %v5559_v2 }
 0x2b1   :  { %v4817_v8 = vsel %vm6479_vm1, %v4808_v48, %v4810_v9  ;;  %v4818_v41 = vsel %vm6480_vm0, %v4810_v9, %v4812_v7 }
 0x2b2   :  { %4969 = vmatprep.subr.mxu0 %v4818_v41 }
 0x2b3   :  { %4970 = vmatpush1.msra.mxu0 %v4817_v8  ;;  %v5057_v15 = vpop.permute.xlu1 %5056 }
 0x2b4   :  { %v5051_v51 = vpop.permute.xlu0 %5050  ;;  %5372 = vmatmul.mubr.msk.f32.vlgmr.msra.gmra.mrb[24].mxu1 %vm6482_vm8, %v6229_v63  ;;  %5376 = vmatmul.mubr.msk.f32.vlgmr.msra.gmra.mrb[6].mxu0 %vm6483_vm14, %v6290_v36 }
 0x2b5   :  { %4899 = vmatpush1.msra.mxu1 %v4815_v10  ;;  %v5063_v11 = vsel %vm6484_vm15, %v5051_v51, %v5053_v58  ;;  %5140 = vmatprep.mubr.f32.mxu0 %v5559_v2 }
 0x2b6   :  { %5076 = vmatprep.subr.mxu0 %v5063_v11  ;;  %4962 = vmatprep.mubr.f32.mxu1 %v5559_v2 }
 0x2b7   :  { %v5061_v21 = vpop.permute.xlu1 %5060 }
 0x2b8   :  { %v5049_v49 = vpop.permute.xlu0 %5048 }
 0x2b9   :  { %v5062_v12 = vsel %vm6485_vm2, %v5049_v49, %v5051_v51 }
 0x2ba   :  { %5077 = vmatpush1.msra.mxu0 %v5062_v12 }
 0x2bb   :  { %5377 = vmatmul.mubr.msk.f32.vlgmr.msra.gmra.mrb[4].mxu0 %vm6486_vm10, %v5047_v20 }
 0x2bc   :  { %v5055_v1 = vpop.permute.xlu0 %5054  ;;  %5375 = vmatmul.mubr.msk.f32.vlgmr.msra.gmra.mrb[24].mxu1 %vm6487_vm11, %v6290_v36  ;;  %5282 = vmatprep.mubr.f32.mxu0 %v5559_v2 }
 0x2bd   :  { %v5064_v63 = vsel %vm6488_vm12, %v5053_v58, %v5055_v1  ;;  %v5065_v16 = vsel %vm6489_vm9, %v5055_v1, %v5057_v15  ;;  %5211 = vmatprep.mubr.f32.mxu1 %v5559_v2 }
 0x2be   :  { %5147 = vmatprep.subr.mxu1 %v5065_v16 }
 0x2bf   :  { %5148 = vmatpush1.msra.mxu1 %v5064_v63 }
 0x2c0   :  { %v5059_v13 = vpop.permute.xlu0 %5058 }
 0x2c1   :  { %v5066_v23 = vsel %vm6490_vm13, %v5057_v15, %v5059_v13  ;;  %v5067_v24 = vsel %vm6491_vm7, %v5059_v13, %v5061_v21 }
 0x2c2   :  { %5218 = vmatprep.subr.mxu0 %v5067_v24 }
 0x2c3   :  { %5219 = vmatpush1.msra.mxu0 %v5066_v23 }
 0x2c4   :  { %5378 = vmatmul.mubr.msk.f32.vlgmr.msra.gmra.mrb[24].mxu1 %vm6492_vm5, %v5047_v20  ;;  %5379 = vmatmul.mubr.msk.f32.vlgmr.msra.gmra.mrb[6].mxu0 %vm6493_vm3, %v5047_v20 }
 0x2d1   :  { %v5299_v22 = vpop.permute.xlu0 %5298 }
 0x38e   :  { %v5142_v25 = vpop.f32.mrb[4].mxu0 }
 0x38f   :  { %v5301_v26 = vadd.f32 %v5299_v22, %v5142_v25  ;;  %v5144_v27 = vpop.f32.mrb[5].mxu0 }
 0x390   :  { %v5302_v28 = vadd.f32 %v5299_v22, %v5144_v27 }
 0x391   :  { %5307 = vst [vmem:[%s6414_s5] sm:$0xff] %v5301_v26 }
 0x392   :  { %5308 = vst [vmem:[%s6414_s5 + $0x8] sm:$0xff] %v5302_v28 }
 0x397   :  { %v5213_v2 = vpop.f32.mrb[24].mxu1  ;;  %v5284_v29 = vpop.f32.mrb[6].mxu0 }
 0x398   :  { %v5303_v30 = vadd.f32 %v5299_v22, %v5213_v2  ;;  %v5305_v31 = vadd.f32 %v5299_v22, %v5284_v29  ;;  %v5215_v32 = vpop.f32.mrb[25].mxu1  ;;  %v5286_v14 = vpop.f32.mrb[7].mxu0 }
 0x399   :  { %v5304_v33 = vadd.f32 %v5299_v22, %v5215_v32  ;;  %v5306_v35 = vadd.f32 %v5299_v22, %v5286_v14 }
 0x39a   :  { %5309 = vst [vmem:[%s6414_s5 + $0x10] sm:$0xff] %v5303_v30  ;;  %5311 = vst [vmem:[%s6414_s5 + $0x20] sm:$0xff] %v5305_v31 }
 0x39b   :  { %5310 = vst [vmem:[%s6414_s5 + $0x18] sm:$0xff] %v5304_v33  ;;  %5312 = vst [vmem:[%s6414_s5 + $0x28] sm:$0xff] %v5306_v35 }

</bundles_post_ra>
